<compile_context>
chip_gen: v6e
topology: v6e:2x2x1
jax: 0.10.0
libtpu: 0.0.40
codegen_flags: <defaults>
</compile_context>

<pallas_src>
import functools
import math

import jax
import jax.numpy as jnp
from jax import lax
from jax.experimental import pallas as pl
from jax.experimental.pallas import tpu as pltpu


_LOG_EPS = math.log(1e-6)  # p >= 1e-6  <=>  z >= log(1e-6) + log_s  (z = x - rowmax)


def _round_up(n, m):
    return ((n + m - 1) // m) * m


def _hloss_kernel(x_ref, o_ref, *, n_valid_rows):
    """One batch tile: masked per-row entropy terms folded to an (8, 1) partial sum.

    x_ref: (TB, C) logits tile (class axis on lanes, full / unpadded C).
    o_ref: (8, 1) f32 partial sums (positive entropy contribution of this tile).
    """
    tb, _ = x_ref.shape
    x = x_ref[...].astype(jnp.float32)                 # f32 compute (required on v5e)

    # Numerically stable softmax pieces: ONE exp per element; log / reciprocal per ROW only.
    m = jnp.max(x, axis=1, keepdims=True)              # (TB, 1)  lane reduce (XLU)
    z = x - m
    e = jnp.exp(z)                                     # EUP: one exp / element
    s = jnp.sum(e, axis=1, keepdims=True)              # (TB, 1)  lane reduce (XLU)
    log_s = jnp.log(s)                                 # per-row only
    inv_s = 1.0 / s                                    # per-row only

    # masked_select + sum == masked sum.  Mask rewritten with a per-row threshold and the
    # per-row 1/s factor pulled out:  sum_mask p*log p = inv_s * sum_mask e*(z - log_s).
    thr = _LOG_EPS + log_s
    terms = jnp.where(z >= thr, e * (z - log_s), 0.0)  # (TB, C)

    row_sum = jnp.sum(terms, axis=1, keepdims=True)    # (TB, 1)  lane reduce (XLU)
    row_ent = row_sum * inv_s                          # per-row multiply only

    # Ragged last batch tile: rows past the array end hold undefined data -> zero them.
    if n_valid_rows is not None:
        row_ids = pl.program_id(0) * tb + lax.broadcasted_iota(jnp.int32, (tb, 1), 0)
        row_ent = jnp.where(row_ids < n_valid_rows, row_ent, 0.0)

    # Fold sublane groups of 8 (layout-trivial); the tiny final reduce happens in the wrapper.
    o_ref[...] = -row_ent.reshape(tb // 8, 8, 1).sum(axis=0)


def _entropy_sum_2d(x2, *, target_block_bytes):
    """Total masked entropy of softmax(x2, axis=1) for a 2-D [N, C] view."""
    n, c = x2.shape
    itemsize = jnp.dtype(x2.dtype).itemsize
    row_mult = 16 if itemsize < 4 else 8               # sublane packing (bf16 packs 16 rows)

    # Byte-budget tile: ~2 MiB input blocks reach ~85%+ of HBM roofline; cap rows so the
    # handful of (TB, 1)/(TB, C) f32 intermediates stay far below the 32 MiB scoped VMEM.
    rows_budget = max(1, target_block_bytes // max(1, c * itemsize))
    tb = _round_up(max(1, min(rows_budget, 2048, n)), row_mult)
    num_tiles = (n + tb - 1) // tb
    # TODO(synk): if even `row_mult` rows of C classes overflow VMEM (huge C), add a second
    # 'arbitrary' grid axis over C with a two-pass / online softmax instead of one C-wide block.

    need_row_mask = num_tiles * tb != n
    kernel = functools.partial(_hloss_kernel, n_valid_rows=(n if need_row_mask else None))

    # 64 MiB scoped VMEM on 128-MiB chips (v5e/v6e), 32 MiB on v7x / unknown targets.
    try:
        vmem_cap = pltpu.get_tpu_info().vmem_capacity_bytes
    except Exception:  # pragma: no cover - conservative fallback
        vmem_cap = 64 * 1024 * 1024
    vmem_limit = min(max(vmem_cap // 2, 32 * 1024 * 1024), 64 * 1024 * 1024)

    cost = pl.CostEstimate(
        flops=8 * n * c,
        transcendentals=n * c + 2 * n,
        bytes_accessed=n * c * itemsize + num_tiles * 8 * 4,
    )

    partials = pl.pallas_call(
        kernel,
        out_shape=jax.ShapeDtypeStruct((num_tiles * 8, 1), jnp.float32),
        grid=(num_tiles,),
        in_specs=[pl.BlockSpec((tb, c), lambda i: (i, 0))],   # last dim = full C (no padding copy)
        out_specs=pl.BlockSpec((8, 1), lambda i: (i, 0)),
        compiler_params=pltpu.CompilerParams(
            # TODO(synk): verify on v7x that 'parallel' shards tiles across both TensorCores;
            # if not, add an explicit leading axis of size 2 with CORE_PARALLEL.
            dimension_semantics=("parallel",),
            vmem_limit_bytes=vmem_limit,
        ),
        cost_estimate=cost,
    )(x2)

    return jnp.sum(partials)


def hloss(x, *, target_block_bytes=2 << 20):
    """Pallas TPU HLoss.forward: softmax over dim 1, masked entropy sum, divided by x.shape[0]."""
    assert x.ndim >= 2, "softmax is taken over dim 1"
    b0 = x.shape[0]
    if x.ndim == 2:
        x2 = x
    else:
        # Put the class axis (dim 1) on lanes; every (batch, spatial...) position is a row.
        # TODO(synk): this transpose is an extra XLA copy for >2-D inputs; fold it into the
        # kernel (class axis on sublanes) if segmentation-style 4-D inputs become the hot path.
        c = x.shape[1]
        x2 = jnp.moveaxis(x, 1, -1).reshape(-1, c)
    ent = _entropy_sum_2d(x2, target_block_bytes=target_block_bytes)
    return ent / jnp.float32(b0)   # divide by the ORIGINAL batch size, like the PyTorch module


def hloss_ref(x):
    # pure-JAX reference mirroring the PyTorch semantics (any ndim, softmax over axis 1)
    xf = x.astype(jnp.float32)
    m = jnp.max(xf, axis=1, keepdims=True)
    e = jnp.exp(xf - m)
    p = e / jnp.sum(e, axis=1, keepdims=True)
    mask = p >= 1e-6
    ent = -jnp.sum(jnp.where(mask, p * jnp.log(jnp.where(mask, p, 1.0)), 0.0))
    return ent / x.shape[0]


if __name__ == "__main__":
    key = jax.random.PRNGKey(0)
    k1, k2, k3, k4 = jax.random.split(key, 4)

    # 4-D segmentation-style logits [B, C, H, W]; softmax over C, divide by B
    x4 = jax.random.normal(k1, (2, 4, 16, 16), dtype=jnp.float32) * 2.0
    out4 = jax.block_until_ready(hloss(x4))
    ref4 = hloss_ref(x4)
    assert jnp.allclose(out4, ref4, rtol=1e-5, atol=1e-5), (out4, ref4)

    # ragged class (37) and batch (6) dims -> unpadded full-C block + row masking, no copies
    x1 = jax.random.normal(k2, (6, 37), dtype=jnp.float32) * 3.0
    out1 = jax.block_until_ready(hloss(x1))
    ref1 = hloss_ref(x1)
    assert jnp.allclose(out1, ref1, rtol=1e-5, atol=1e-5), (out1, ref1)

    # bf16 logits + tiny block budget -> multi-tile grid with a ragged last tile
    xb = (jax.random.normal(k3, (40, 200), dtype=jnp.float32) * 2.0).astype(jnp.bfloat16)
    outb = jax.block_until_ready(hloss(xb, target_block_bytes=6400))
    refb = hloss_ref(xb)
    assert jnp.allclose(outb, refb, rtol=1e-4, atol=1e-4), (outb, refb)

    # fully aligned case: C a multiple of 128, batch an exact multiple of the tile
    x3 = jax.random.normal(k4, (64, 256), dtype=jnp.float32) * 1.5
    out3 = jax.block_until_ready(hloss(x3, target_block_bytes=32 * 1024))
    ref3 = hloss_ref(x3)
    assert jnp.allclose(out3, ref3, rtol=1e-5, atol=1e-5), (out3, ref3)

    print("KERNEL_OK")
</pallas_src>

<mosaic_0001>
module attributes {stable_mosaic.version = 11 : i64} {
  func.func @_hloss_kernel(%arg0: i32, %arg1: memref<512x4xf32, #tpu.memory_space<vmem>>, %arg2: memref<8x1xf32, #tpu.memory_space<vmem>>) attributes {dimension_semantics = [#tpu.dimension_semantics<parallel>], iteration_bounds = array<i64: 1>, scalar_prefetch = 0 : i64, scratch_operands = 0 : i64, tpu.core_type = #tpu.core_type<tc>, window_params = [{transform_indices = @transform_0, window_bounds = array<i64: 512, 4>}, {transform_indices = @transform_1, window_bounds = array<i64: 8, 1>}]} {
    %c0 = arith.constant 0 : index
    %c0_0 = arith.constant 0 : index
    %0 = vector.load %arg1[%c0, %c0_0] : memref<512x4xf32, #tpu.memory_space<vmem>>, vector<512x4xf32>
    %cst = arith.constant dense<0xFF800000> : vector<512xf32>
    %1 = vector.multi_reduction <maximumf>, %0, %cst [1] : vector<512x4xf32> to vector<512xf32>
    %2 = vector.shape_cast %1 : vector<512xf32> to vector<512x1xf32>
    %3 = vector.broadcast %2 : vector<512x1xf32> to vector<512x4xf32>
    %4 = arith.subf %0, %3 : vector<512x4xf32>
    %5 = math.exp %4 : vector<512x4xf32>
    %cst_1 = arith.constant dense<0.000000e+00> : vector<512xf32>
    %6 = vector.multi_reduction <add>, %5, %cst_1 [1] : vector<512x4xf32> to vector<512xf32>
    %7 = vector.shape_cast %6 : vector<512xf32> to vector<512x1xf32>
    %8 = math.log %7 : vector<512x1xf32>
    %cst_2 = arith.constant 1.000000e+00 : f32
    %9 = vector.broadcast %cst_2 : f32 to vector<512x1xf32>
    %10 = arith.divf %9, %7 : vector<512x1xf32>
    %cst_3 = arith.constant -13.8155107 : f32
    %11 = vector.broadcast %cst_3 : f32 to vector<512x1xf32>
    %12 = arith.addf %11, %8 : vector<512x1xf32>
    %13 = vector.broadcast %12 : vector<512x1xf32> to vector<512x4xf32>
    %14 = arith.cmpf oge, %4, %13 : vector<512x4xf32>
    %15 = vector.broadcast %8 : vector<512x1xf32> to vector<512x4xf32>
    %16 = arith.subf %4, %15 : vector<512x4xf32>
    %17 = arith.mulf %5, %16 : vector<512x4xf32>
    %cst_4 = arith.constant 0.000000e+00 : f32
    %18 = vector.broadcast %cst_4 : f32 to vector<512x4xf32>
    %19 = arith.select %14, %17, %18 : vector<512x4xi1>, vector<512x4xf32>
    %cst_5 = arith.constant dense<0.000000e+00> : vector<512xf32>
    %20 = vector.multi_reduction <add>, %19, %cst_5 [1] : vector<512x4xf32> to vector<512xf32>
    %21 = vector.shape_cast %20 : vector<512xf32> to vector<512x1xf32>
    %22 = arith.mulf %21, %10 : vector<512x1xf32>
    %23 = vector.shape_cast %22 : vector<512x1xf32> to vector<64x8x1xf32>
    %cst_6 = arith.constant dense<0.000000e+00> : vector<8x1xf32>
    %24 = vector.multi_reduction <add>, %23, %cst_6 [0] : vector<64x8x1xf32> to vector<8x1xf32>
    %cst_7 = arith.constant 0.000000e+00 : f32
    %25 = vector.broadcast %cst_7 : f32 to vector<8x1xf32>
    %26 = arith.subf %25, %24 : vector<8x1xf32>
    %c0_8 = arith.constant 0 : index
    %c0_9 = arith.constant 0 : index
    %27 = vector.load %arg2[%c0_8, %c0_9] : memref<8x1xf32, #tpu.memory_space<vmem>>, vector<8x1xf32>
    tpu.vector_store %arg2[%c0_8, %c0_9], %26 {strides = array<i32>} : memref<8x1xf32, #tpu.memory_space<vmem>>, vector<8x1xf32>,
    return
  }
  func.func @transform_0(%arg0: i32) -> (i32, i32) {
    %c0_i32 = arith.constant 0 : i32
    %c0_i32_0 = arith.constant 0 : i32
    return %arg0, %c0_i32 : i32, i32
  }
  func.func @transform_1(%arg0: i32) -> (i32, i32) {
    %c0_i32 = arith.constant 0 : i32
    %c0_i32_0 = arith.constant 0 : i32
    return %arg0, %c0_i32 : i32, i32
  }
}

</mosaic_0001>

<bundles_post_ra>
// kernel: tpu_custom_call.1
= control target key start
LH: loop header
LB: loop body
LE: loop exit
PB: predicated region body
PF: predicated region fallthrough
CT: control target
= control target key end

     0   :  { %vm72_vm0 = vcmask 31744   ;;  %s3539_s0 = inlined_call_operand.vmem [shape: f32[512,4], index: 0, kind: input, shape index: {}]   ;;  %s3540_s1 = inlined_call_operand.vmem [shape: f32[8,1], index: 1, kind: output, shape index: {}]  }
   0x1   :  { %v1948_v0 = vld [vmem:[%s3539_s0] sm:$0xff]  ;;  %v1953_v1 = vld [vmem:[%s3539_s0 + $0x8] sm:$0xff]  ;;  %v1958_v2 = vld [vmem:[%s3539_s0 + $0x10] sm:$0xff] }
   0x2   :  { %v73_v3 = vsel %vm72_vm0, %v1948_v0, -inf  ;;  %v79_v4 = vsel %vm72_vm0, %v1958_v2, -inf  ;;  %v1967_v5 = vld [vmem:[%s3539_s0 + $0x18] sm:$0xff]  ;;  %v76_v6 = vsel %vm72_vm0, %v1953_v1, -inf  ;;  %v1976_v8 = vld [vmem:[%s3539_s0 + $0x20] sm:$0xff]  ;;  %v1981_v9 = vld [vmem:[%s3539_s0 + $0x28] sm:$0xff] }
   0x3   :  { %74 = vmax.xlane.f32.xlu0 %v73_v3  ;;  %80 = vmax.xlane.f32.xlu1 %v79_v4  ;;  %v82_v7 = vsel %vm72_vm0, %v1967_v5, -inf  ;;  %v85_v10 = vsel %vm72_vm0, %v1976_v8, -inf  ;;  %v88_v11 = vsel %vm72_vm0, %v1981_v9, -inf  ;;  %v1990_v12 = vld [vmem:[%s3539_s0 + $0x30] sm:$0xff]  ;;  %v1995_v13 = vld [vmem:[%s3539_s0 + $0x38] sm:$0xff]  ;;  %v2004_v16 = vld [vmem:[%s3539_s0 + $0x40] sm:$0xff] }
   0x4   :  { %v91_v14 = vsel %vm72_vm0, %v1990_v12, -inf  ;;  %v94_v15 = vsel %vm72_vm0, %v1995_v13, -inf  ;;  %v2009_v17 = vld [vmem:[%s3539_s0 + $0x48] sm:$0xff]  ;;  %v97_v18 = vsel %vm72_vm0, %v2004_v16, -inf  ;;  %v2018_v20 = vld [vmem:[%s3539_s0 + $0x50] sm:$0xff]  ;;  %v2023_v21 = vld [vmem:[%s3539_s0 + $0x58] sm:$0xff] }
   0x5   :  { %v100_v19 = vsel %vm72_vm0, %v2009_v17, -inf  ;;  %v103_v22 = vsel %vm72_vm0, %v2018_v20, -inf  ;;  %v106_v23 = vsel %vm72_vm0, %v2023_v21, -inf  ;;  %v2032_v24 = vld [vmem:[%s3539_s0 + $0x60] sm:$0xff]  ;;  %v2037_v25 = vld [vmem:[%s3539_s0 + $0x68] sm:$0xff]  ;;  %v2046_v28 = vld [vmem:[%s3539_s0 + $0x70] sm:$0xff] }
   0x6   :  { %v109_v26 = vsel %vm72_vm0, %v2032_v24, -inf  ;;  %v112_v27 = vsel %vm72_vm0, %v2037_v25, -inf  ;;  %v2051_v29 = vld [vmem:[%s3539_s0 + $0x78] sm:$0xff]  ;;  %v115_v30 = vsel %vm72_vm0, %v2046_v28, -inf  ;;  %v2060_v32 = vld [vmem:[%s3539_s0 + $0x80] sm:$0xff]  ;;  %v2065_v33 = vld [vmem:[%s3539_s0 + $0x88] sm:$0xff] }
   0x7   :  { %77 = vmax.xlane.f32.xlu0 %v76_v6  ;;  %83 = vmax.xlane.f32.xlu1 %v82_v7  ;;  %v118_v31 = vsel %vm72_vm0, %v2051_v29, -inf  ;;  %v121_v34 = vsel %vm72_vm0, %v2060_v32, -inf  ;;  %v124_v35 = vsel %vm72_vm0, %v2065_v33, -inf  ;;  %v2074_v36 = vld [vmem:[%s3539_s0 + $0x90] sm:$0xff]  ;;  %v2079_v37 = vld [vmem:[%s3539_s0 + $0x98] sm:$0xff]  ;;  %v2088_v40 = vld [vmem:[%s3539_s0 + $0xa0] sm:$0xff] }
   0x8   :  { %v127_v38 = vsel %vm72_vm0, %v2074_v36, -inf  ;;  %v130_v39 = vsel %vm72_vm0, %v2079_v37, -inf  ;;  %v2093_v41 = vld [vmem:[%s3539_s0 + $0xa8] sm:$0xff]  ;;  %v133_v42 = vsel %vm72_vm0, %v2088_v40, -inf  ;;  %v2102_v44 = vld [vmem:[%s3539_s0 + $0xb0] sm:$0xff]  ;;  %v2107_v45 = vld [vmem:[%s3539_s0 + $0xb8] sm:$0xff] }
   0x9   :  { %v136_v43 = vsel %vm72_vm0, %v2093_v41, -inf  ;;  %v139_v46 = vsel %vm72_vm0, %v2102_v44, -inf  ;;  %v142_v47 = vsel %vm72_vm0, %v2107_v45, -inf  ;;  %v2116_v48 = vld [vmem:[%s3539_s0 + $0xc0] sm:$0xff]  ;;  %v2121_v49 = vld [vmem:[%s3539_s0 + $0xc8] sm:$0xff]  ;;  %v2130_v52 = vld [vmem:[%s3539_s0 + $0xd0] sm:$0xff] }
   0xa   :  { %v145_v50 = vsel %vm72_vm0, %v2116_v48, -inf  ;;  %v148_v51 = vsel %vm72_vm0, %v2121_v49, -inf  ;;  %v2135_v53 = vld [vmem:[%s3539_s0 + $0xd8] sm:$0xff]  ;;  %v151_v54 = vsel %vm72_vm0, %v2130_v52, -inf  ;;  %v2144_v56 = vld [vmem:[%s3539_s0 + $0xe0] sm:$0xff]  ;;  %v2149_v57 = vld [vmem:[%s3539_s0 + $0xe8] sm:$0xff] }
   0xb   :  { %86 = vmax.xlane.f32.xlu0 %v85_v10  ;;  %89 = vmax.xlane.f32.xlu1 %v88_v11  ;;  %v154_v55 = vsel %vm72_vm0, %v2135_v53, -inf  ;;  %v157_v58 = vsel %vm72_vm0, %v2144_v56, -inf  ;;  %v160_v59 = vsel %vm72_vm0, %v2149_v57, -inf  ;;  %v2158_v60 = vld [vmem:[%s3539_s0 + $0xf0] sm:$0xff]  ;;  %v2163_v61 = vld [vmem:[%s3539_s0 + $0xf8] sm:$0xff]  ;;  %v2172_v3 = vld [vmem:[%s3539_s0 + $0x100] sm:$0xff] }
   0xc   :  { %v163_v62 = vsel %vm72_vm0, %v2158_v60, -inf  ;;  %v166_v63 = vsel %vm72_vm0, %v2163_v61, -inf  ;;  %v2177_v4 = vld [vmem:[%s3539_s0 + $0x108] sm:$0xff]  ;;  %v169_v6 = vsel %vm72_vm0, %v2172_v3, -inf  ;;  %v2186_v10 = vld [vmem:[%s3539_s0 + $0x110] sm:$0xff]  ;;  %v2191_v11 = vld [vmem:[%s3539_s0 + $0x118] sm:$0xff] }
   0xd   :  { %v172_v7 = vsel %vm72_vm0, %v2177_v4, -inf }
   0xf   :  { %92 = vmax.xlane.f32.xlu0 %v91_v14  ;;  %95 = vmax.xlane.f32.xlu1 %v94_v15  ;;  %v175_v14 = vsel %vm72_vm0, %v2186_v10, -inf  ;;  %v178_v15 = vsel %vm72_vm0, %v2191_v11, -inf }
  0x13   :  { %98 = vmax.xlane.f32.xlu0 %v97_v18  ;;  %101 = vmax.xlane.f32.xlu1 %v100_v19  ;;  %v2200_v18 = vld [vmem:[%s3539_s0 + $0x120] sm:$0xff]  ;;  %v2205_v19 = vld [vmem:[%s3539_s0 + $0x128] sm:$0xff] }
  0x17   :  { %104 = vmax.xlane.f32.xlu0 %v103_v22  ;;  %107 = vmax.xlane.f32.xlu1 %v106_v23  ;;  %v181_v22 = vsel %vm72_vm0, %v2200_v18, -inf  ;;  %v184_v23 = vsel %vm72_vm0, %v2205_v19, -inf }
  0x1b   :  { %110 = vmax.xlane.f32.xlu0 %v109_v26  ;;  %113 = vmax.xlane.f32.xlu1 %v112_v27  ;;  %v2214_v26 = vld [vmem:[%s3539_s0 + $0x130] sm:$0xff]  ;;  %v2219_v27 = vld [vmem:[%s3539_s0 + $0x138] sm:$0xff] }
  0x1f   :  { %116 = vmax.xlane.f32.xlu0 %v115_v30  ;;  %119 = vmax.xlane.f32.xlu1 %v118_v31  ;;  %v187_v30 = vsel %vm72_vm0, %v2214_v26, -inf  ;;  %v190_v31 = vsel %vm72_vm0, %v2219_v27, -inf }
  0x23   :  { %122 = vmax.xlane.f32.xlu0 %v121_v34  ;;  %125 = vmax.xlane.f32.xlu1 %v124_v35  ;;  %v2228_v34 = vld [vmem:[%s3539_s0 + $0x140] sm:$0xff]  ;;  %v2233_v35 = vld [vmem:[%s3539_s0 + $0x148] sm:$0xff] }
  0x27   :  { %128 = vmax.xlane.f32.xlu0 %v127_v38  ;;  %131 = vmax.xlane.f32.xlu1 %v130_v39  ;;  %v193_v38 = vsel %vm72_vm0, %v2228_v34, -inf  ;;  %v196_v39 = vsel %vm72_vm0, %v2233_v35, -inf }
  0x2b   :  { %134 = vmax.xlane.f32.xlu0 %v133_v42  ;;  %137 = vmax.xlane.f32.xlu1 %v136_v43  ;;  %v2242_v42 = vld [vmem:[%s3539_s0 + $0x150] sm:$0xff]  ;;  %v2247_v43 = vld [vmem:[%s3539_s0 + $0x158] sm:$0xff] }
  0x2f   :  { %140 = vmax.xlane.f32.xlu0 %v139_v46  ;;  %143 = vmax.xlane.f32.xlu1 %v142_v47  ;;  %v199_v46 = vsel %vm72_vm0, %v2242_v42, -inf  ;;  %v202_v47 = vsel %vm72_vm0, %v2247_v43, -inf }
  0x33   :  { %146 = vmax.xlane.f32.xlu0 %v145_v50  ;;  %149 = vmax.xlane.f32.xlu1 %v148_v51  ;;  %v2256_v50 = vld [vmem:[%s3539_s0 + $0x160] sm:$0xff]  ;;  %v2261_v51 = vld [vmem:[%s3539_s0 + $0x168] sm:$0xff] }
  0x37   :  { %152 = vmax.xlane.f32.xlu0 %v151_v54  ;;  %155 = vmax.xlane.f32.xlu1 %v154_v55  ;;  %v205_v54 = vsel %vm72_vm0, %v2256_v50, -inf  ;;  %v208_v55 = vsel %vm72_vm0, %v2261_v51, -inf }
  0x3b   :  { %158 = vmax.xlane.f32.xlu0 %v157_v58  ;;  %161 = vmax.xlane.f32.xlu1 %v160_v59  ;;  %v2270_v58 = vld [vmem:[%s3539_s0 + $0x170] sm:$0xff] }
  0x3c   :  { %v211_v59 = vsel %vm72_vm0, %v2270_v58, -inf }
  0x3f   :  { %164 = vmax.xlane.f32.xlu0 %v163_v62  ;;  %167 = vmax.xlane.f32.xlu1 %v166_v63  ;;  %v2277_v62 = vld [vmem:[%s3539_s0 + $0x178] sm:$0xff] }
  0x40   :  { %3709 = vst [vmem:[#allocation2_spill] sm:$0xff] %v2277_v62  ;;  %v214_v63 = vsel %vm72_vm0, %v2277_v62, -inf }
  0x43   :  { %170 = vmax.xlane.f32.xlu0 %v169_v6  ;;  %173 = vmax.xlane.f32.xlu1 %v172_v7  ;;  %v2284_v6 = vld [vmem:[%s3539_s0 + $0x180] sm:$0xff] }
  0x44   :  { %v217_v7 = vsel %vm72_vm0, %v2284_v6, -inf }
  0x47   :  { %176 = vmax.xlane.f32.xlu0 %v175_v14  ;;  %179 = vmax.xlane.f32.xlu1 %v178_v15  ;;  %v2291_v14 = vld [vmem:[%s3539_s0 + $0x188] sm:$0xff] }
  0x48   :  { %v220_v15 = vsel %vm72_vm0, %v2291_v14, -inf }
  0x4b   :  { %182 = vmax.xlane.f32.xlu0 %v181_v22  ;;  %185 = vmax.xlane.f32.xlu1 %v184_v23  ;;  %v2298_v22 = vld [vmem:[%s3539_s0 + $0x190] sm:$0xff] }
  0x4c   :  { %v223_v23 = vsel %vm72_vm0, %v2298_v22, -inf }
  0x4f   :  { %188 = vmax.xlane.f32.xlu0 %v187_v30  ;;  %191 = vmax.xlane.f32.xlu1 %v190_v31  ;;  %v2305_v30 = vld [vmem:[%s3539_s0 + $0x198] sm:$0xff] }
  0x50   :  { %v226_v31 = vsel %vm72_vm0, %v2305_v30, -inf }
  0x53   :  { %194 = vmax.xlane.f32.xlu0 %v193_v38  ;;  %197 = vmax.xlane.f32.xlu1 %v196_v39  ;;  %v2312_v38 = vld [vmem:[%s3539_s0 + $0x1a0] sm:$0xff] }
  0x54   :  { %v229_v39 = vsel %vm72_vm0, %v2312_v38, -inf }
  0x57   :  { %200 = vmax.xlane.f32.xlu0 %v199_v46  ;;  %203 = vmax.xlane.f32.xlu1 %v202_v47  ;;  %v2319_v46 = vld [vmem:[%s3539_s0 + $0x1a8] sm:$0xff] }
  0x58   :  { %v232_v47 = vsel %vm72_vm0, %v2319_v46, -inf }
  0x5b   :  { %206 = vmax.xlane.f32.xlu0 %v205_v54  ;;  %209 = vmax.xlane.f32.xlu1 %v208_v55  ;;  %v2326_v54 = vld [vmem:[%s3539_s0 + $0x1b0] sm:$0xff] }
  0x5c   :  { %3710 = vst [vmem:[#allocation3_spill] sm:$0xff] %v2326_v54  ;;  %v235_v55 = vsel %vm72_vm0, %v2326_v54, -inf }
  0x5f   :  { %212 = vmax.xlane.f32.xlu0 %v211_v59  ;;  %v2333_v59 = vld [vmem:[%s3539_s0 + $0x1b8] sm:$0xff] }
  0x60   :  { %3711 = vst [vmem:[#allocation4_spill] sm:$0xff] %v2333_v59 }
  0x63   :  { %215 = vmax.xlane.f32.xlu0 %v214_v63  ;;  %v238_v63 = vsel %vm72_vm0, %v2333_v59, -inf }
  0x67   :  { %218 = vmax.xlane.f32.xlu0 %v217_v7  ;;  %v2340_v7 = vld [vmem:[%s3539_s0 + $0x1c0] sm:$0xff] }
  0x68   :  { %3712 = vst [vmem:[#allocation5_spill] sm:$0xff] %v2340_v7 }
  0x6b   :  { %221 = vmax.xlane.f32.xlu0 %v220_v15  ;;  %v241_v15 = vsel %vm72_vm0, %v2340_v7, -inf }
  0x6f   :  { %224 = vmax.xlane.f32.xlu0 %v223_v23  ;;  %v2347_v23 = vld [vmem:[%s3539_s0 + $0x1c8] sm:$0xff] }
  0x70   :  { %3713 = vst [vmem:[#allocation6_spill] sm:$0xff] %v2347_v23 }
  0x73   :  { %227 = vmax.xlane.f32.xlu0 %v226_v31  ;;  %v244_v31 = vsel %vm72_vm0, %v2347_v23, -inf }
  0x77   :  { %230 = vmax.xlane.f32.xlu0 %v229_v39  ;;  %v2354_v39 = vld [vmem:[%s3539_s0 + $0x1d0] sm:$0xff] }
  0x78   :  { %3714 = vst [vmem:[#allocation7_spill] sm:$0xff] %v2354_v39 }
  0x7b   :  { %233 = vmax.xlane.f32.xlu0 %v232_v47 }
  0x7f   :  { %236 = vmax.xlane.f32.xlu0 %v235_v55  ;;  %v247_v55 = vsel %vm72_vm0, %v2354_v39, -inf }
  0x83   :  { %239 = vmax.xlane.f32.xlu0 %v238_v63 }
  0x87   :  { %242 = vmax.xlane.f32.xlu0 %v241_v15  ;;  %v2364_v15 = vld [vmem:[%s3539_s0 + $0x1d8] sm:$0xff] }
  0x88   :  { %v250_v62 = vsel %vm72_vm0, %v2364_v15, -inf }
  0x8b   :  { %245 = vmax.xlane.f32.xlu0 %v244_v31 }
  0x8c   :  { %v75_v47 = vpop.xlane.xlu0 %74  ;;  %v81_v63 = vpop.xlane.xlu1 %80 }
  0x8d   :  { %v2359_v7 = vsub.f32 %v1948_v0, %v75_v47  ;;  %v2367_v23 = vsub.f32 %v1958_v2, %v81_v63  ;;  %v2379_v47 = vld [vmem:[%s3539_s0 + $0x1e0] sm:$0xff] }
  0x8e   :  { %3718 = vst [vmem:[#allocation11_spill] sm:$0xff] %v2379_v47 }
  0x8f   :  { %3715 = vst [vmem:[#allocation8_spill] sm:$0xff] %v2359_v7  ;;  %3716 = vst [vmem:[#allocation9_spill] sm:$0xff] %v2367_v23  ;;  %v329_v59 = vmul.f32 1.442695, %v2359_v7  ;;  %248 = vmax.xlane.f32.xlu0 %v247_v55  ;;  %v333_v39 = vmul.f32 1.442695, %v2367_v23 }
  0x90   :  { %v78_v31 = vpop.xlane.xlu0 %77  ;;  %v84_v54 = vpop.xlane.xlu1 %83  ;;  %v253_v23 = vsel %vm72_vm0, %v2379_v47, -inf }
  0x91   :  { %v2374_v0 = vsub.f32 %v1953_v1, %v78_v31  ;;  %v2382_v2 = vsub.f32 %v1967_v5, %v84_v54  ;;  %1551 = vpow2.f32 %v329_v59  ;;  %v2391_v31 = vld [vmem:[%s3539_s0 + $0x1e8] sm:$0xff]  ;;  %v2401_v59 = vld [vmem:[%s3539_s0 + $0x1f0] sm:$0xff] }
  0x92   :  { %1553 = vpow2.f32 %v333_v39  ;;  %3720 = vst [vmem:[#allocation13_spill] sm:$0xff] %v2391_v31  ;;  %3722 = vst [vmem:[#allocation15_spill] sm:$0xff] %v2401_v59 }
  0x93   :  { %3717 = vst [vmem:[#allocation10_spill] sm:$0xff] %v2374_v0  ;;  %3719 = vst [vmem:[#allocation12_spill] sm:$0xff] %v2382_v2  ;;  %v331_v55 = vmul.f32 1.442695, %v2374_v0  ;;  %251 = vmax.xlane.f32.xlu0 %v250_v62  ;;  %v335_v1 = vmul.f32 1.442695, %v2382_v2 }
  0x94   :  { %v87_v63 = vpop.xlane.xlu0 %86  ;;  %v90_v7 = vpop.xlane.xlu1 %89  ;;  %v256_v62 = vsel %vm72_vm0, %v2391_v31, -inf }
  0x95   :  { %1555 = vpow2.f32 %v331_v55  ;;  %v2394_v5 = vsub.f32 %v1976_v8, %v87_v63  ;;  %v2404_v39 = vsub.f32 %v1981_v9, %v90_v7 }
  0x96   :  { %1557 = vpow2.f32 %v335_v1 }
  0x97   :  { %3721 = vst [vmem:[#allocation14_spill] sm:$0xff] %v2394_v5  ;;  %254 = vmax.xlane.f32.xlu0 %v253_v23  ;;  %3723 = vst [vmem:[#allocation16_spill] sm:$0xff] %v2404_v39  ;;  %v337_v55 = vmul.f32 1.442695, %v2394_v5  ;;  %v259_v23 = vsel %vm72_vm0, %v2401_v59, -inf  ;;  %v2423_v5 = vld [vmem:[%s3539_s0 + $0x1f8] sm:$0xff] }
  0x98   :  { %v93_v54 = vpop.xlane.xlu0 %92  ;;  %v96_v2 = vpop.xlane.xlu1 %95  ;;  %v339_v63 = vmul.f32 1.442695, %v2404_v39  ;;  %3728 = vst [vmem:[#allocation21_spill] sm:$0xff] %v2423_v5 }
  0x99   :  { %1559 = vpow2.f32 %v337_v55  ;;  %v2413_v1 = vsub.f32 %v1990_v12, %v93_v54 }
  0x9a   :  { %1561 = vpow2.f32 %v339_v63 }
  0x9b   :  { %257 = vmax.xlane.f32.xlu0 %v256_v62  ;;  %3725 = vst [vmem:[#allocation18_spill] sm:$0xff] %v2413_v1  ;;  %v2418_v62 = vsub.f32 %v1995_v13, %v96_v2  ;;  %v341_v54 = vmul.f32 1.442695, %v2413_v1  ;;  %v262_v2 = vsel %vm72_vm0, %v2423_v5, -inf }
  0x9c   :  { %v99_v8 = vpop.xlane.xlu0 %98  ;;  %v102_v0 = vpop.xlane.xlu1 %101 }
  0x9d   :  { %3727 = vst [vmem:[#allocation20_spill] sm:$0xff] %v2418_v62  ;;  %v343_v63 = vmul.f32 1.442695, %v2418_v62  ;;  %1563 = vpow2.f32 %v341_v54  ;;  %v2440_v1 = vsub.f32 %v2004_v16, %v99_v8  ;;  %v2445_v5 = vsub.f32 %v2009_v17, %v102_v0 }
  0x9e   :  { %v2410_v31 = vpop.eup %1551 }
  0x9f   :  { %3724 = vst [vmem:[#allocation17_spill] sm:$0xff] %v2410_v31  ;;  %260 = vmax.xlane.f32.xlu0 %v259_v23  ;;  %v2415_v7 = vpop.eup %1553  ;;  %v457_v12 = vsel %vm72_vm0, %v2410_v31, 0.0  ;;  %3730 = vst [vmem:[#allocation23_spill] sm:$0xff] %v2440_v1  ;;  %1565 = vpow2.f32 %v343_v63  ;;  %v345_v62 = vmul.f32 1.442695, %v2440_v1 }
  0xa0   :  { %v105_v9 = vpop.xlane.xlu0 %104  ;;  %3726 = vst [vmem:[#allocation19_spill] sm:$0xff] %v2415_v7  ;;  %v108_v23 = vpop.xlane.xlu1 %107  ;;  %v463_v59 = vsel %vm72_vm0, %v2415_v7, 0.0  ;;  %3731 = vst [vmem:[#allocation24_spill] sm:$0xff] %v2445_v5  ;;  %v347_v16 = vmul.f32 1.442695, %v2445_v5 }
  0xa1   :  { %1567 = vpow2.f32 %v345_v62  ;;  %v2465_v63 = vsub.f32 %v2023_v21, %v108_v23 }
  0xa2   :  { %v2425_v39 = vpop.eup %1555  ;;  %1569 = vpow2.f32 %v347_v16 }
  0xa3   :  { %3729 = vst [vmem:[#allocation22_spill] sm:$0xff] %v2425_v39  ;;  %458 = vadd.xlane.f32.xlu0 %v457_v12  ;;  %v460_v55 = vsel %vm72_vm0, %v2425_v39, 0.0  ;;  %v2437_v47 = vpop.eup %1557  ;;  %v351_v1 = vmul.f32 1.442695, %v2465_v63 }
  0xa4   :  { %461 = vadd.xlane.f32.xlu1 %v460_v55  ;;  %v111_v13 = vpop.xlane.xlu0 %110  ;;  %v114_v12 = vpop.xlane.xlu1 %113  ;;  %v466_v55 = vsel %vm72_vm0, %v2437_v47, 0.0 }
  0xa5   :  { %v2481_v21 = vsub.f32 %v2032_v24, %v111_v13 }
  0xa6   :  { %v2448_v31 = vpop.eup %1559 }
  0xa7   :  { %263 = vmax.xlane.f32.xlu0 %v262_v2  ;;  %3732 = vst [vmem:[#allocation25_spill] sm:$0xff] %v2448_v31  ;;  %v2453_v8 = vpop.eup %1561  ;;  %v469_v17 = vsel %vm72_vm0, %v2448_v31, 0.0  ;;  %v353_v13 = vmul.f32 1.442695, %v2481_v21 }
  0xa8   :  { %464 = vadd.xlane.f32.xlu1 %v463_v59  ;;  %v117_v39 = vpop.xlane.xlu0 %116  ;;  %v120_v7 = vpop.xlane.xlu1 %119  ;;  %v2456_v59 = vsub.f32 %v2018_v20, %v105_v9 }
  0xaa   :  { %3733 = vst [vmem:[#allocation26_spill] sm:$0xff] %v2456_v59  ;;  %v349_v62 = vmul.f32 1.442695, %v2456_v59  ;;  %v2472_v20 = vpop.eup %1563  ;;  %v2487_v59 = vsub.f32 %v2037_v25, %v114_v12 }
  0xab   :  { %v475_v16 = vsel %vm72_vm0, %v2472_v20, 0.0 }
  0xac   :  { %467 = vadd.xlane.f32.xlu1 %v466_v55  ;;  %v2450_v54 = vpop.xlane.xlu0 %122  ;;  %v2460_v0 = vpop.xlane.xlu1 %125  ;;  %v472_v55 = vsel %vm72_vm0, %v2453_v8, 0.0  ;;  %1571 = vpow2.f32 %v349_v62  ;;  %v355_v25 = vmul.f32 1.442695, %v2487_v59 }
  0xad   :  { %v2478_v31 = vpop.eup %1565  ;;  %1573 = vpow2.f32 %v351_v1 }
  0xae   :  { %v478_v62 = vsel %vm72_vm0, %v2478_v31, 0.0 }
  0xb0   :  { %470 = vadd.xlane.f32.xlu1 %v469_v17  ;;  %v2462_v2 = vpop.xlane.xlu0 %128  ;;  %v2470_v5 = vpop.xlane.xlu1 %131 }
  0xb4   :  { %473 = vadd.xlane.f32.xlu1 %v472_v55  ;;  %v135_v9 = vpop.xlane.xlu0 %134  ;;  %v2494_v24 = vpop.xlane.xlu1 %137 }
  0xb5   :  { %v2476_v17 = vsub.f32 %v2088_v40, %v135_v9 }
  0xb7   :  { %3734 = vst [vmem:[#allocation27_spill] sm:$0xff] %v2476_v17  ;;  %v369_v23 = vmul.f32 1.442695, %v2476_v17  ;;  %v2498_v17 = vpop.eup %1567 }
  0xb8   :  { %476 = vadd.xlane.f32.xlu1 %v475_v16  ;;  %v141_v55 = vpop.xlane.xlu0 %140 }
  0xb9   :  { %1575 = vpow2.f32 %v369_v23  ;;  %v2490_v40 = vsub.f32 %v2102_v44, %v141_v55  ;;  %v2504_v44 = vpop.eup %1569  ;;  %v2507_v23 = vsub.f32 %v2046_v28, %v117_v39  ;;  %v481_v55 = vsel %vm72_vm0, %v2498_v17, 0.0 }
  0xba   :  { %v484_v28 = vsel %vm72_vm0, %v2504_v44, 0.0 }
  0xbb   :  { %3735 = vst [vmem:[#allocation28_spill] sm:$0xff] %v2490_v40  ;;  %v373_v9 = vmul.f32 1.442695, %v2490_v40  ;;  %v2512_v40 = vpop.xlane.xlu1 %143  ;;  %v357_v39 = vmul.f32 1.442695, %v2507_v23 }
  0xbc   :  { %479 = vadd.xlane.f32.xlu1 %v478_v62  ;;  %v147_v1 = vpop.xlane.xlu0 %146 }
  0xbd   :  { %1577 = vpow2.f32 %v373_v9  ;;  %v2502_v12 = vsub.f32 %v2116_v48, %v147_v1  ;;  %v2515_v9 = vsub.f32 %v2051_v29, %v120_v7  ;;  %v2524_v1 = vpop.eup %1571 }
  0xbe   :  { %1579 = vpow2.f32 %v353_v13 }
  0xbf   :  { %3736 = vst [vmem:[#allocation29_spill] sm:$0xff] %v2502_v12  ;;  %v377_v16 = vmul.f32 1.442695, %v2502_v12  ;;  %1581 = vpow2.f32 %v355_v25  ;;  %v2527_v12 = vpop.eup %1573 }
  0xc0   :  { %482 = vadd.xlane.f32.xlu1 %v481_v55  ;;  %v153_v62 = vpop.xlane.xlu0 %152  ;;  %v359_v55 = vmul.f32 1.442695, %v2515_v9 }
  0xc1   :  { %1583 = vpow2.f32 %v377_v16  ;;  %v2518_v48 = vsub.f32 %v2130_v52, %v153_v62  ;;  %v2532_v52 = vpop.xlane.xlu1 %149  ;;  %v2538_v16 = vsub.f32 %v2060_v32, %v2450_v54  ;;  %v490_v54 = vsel %vm72_vm0, %v2527_v12, 0.0 }
  0xc3   :  { %3737 = vst [vmem:[#allocation30_spill] sm:$0xff] %v2518_v48  ;;  %v381_v13 = vmul.f32 1.442695, %v2518_v48 }
  0xc4   :  { %485 = vadd.xlane.f32.xlu1 %v484_v28  ;;  %v159_v25 = vpop.xlane.xlu0 %158  ;;  %v487_v28 = vsel %vm72_vm0, %v2524_v1, 0.0 }
  0xc5   :  { %1585 = vpow2.f32 %v381_v13  ;;  %v2530_v29 = vsub.f32 %v2144_v56, %v159_v25  ;;  %v2547_v25 = vsub.f32 %v2065_v33, %v2460_v0 }
  0xc6   :  { %v2534_v7 = vpop.eup %1575  ;;  %1587 = vpow2.f32 %v357_v39 }
  0xc7   :  { %3738 = vst [vmem:[#allocation31_spill] sm:$0xff] %v2530_v29  ;;  %v385_v62 = vmul.f32 1.442695, %v2530_v29  ;;  %v517_v13 = vsel %vm72_vm0, %v2534_v7, 0.0  ;;  %1589 = vpow2.f32 %v359_v55  ;;  %v361_v29 = vmul.f32 1.442695, %v2538_v16 }
  0xc8   :  { %488 = vadd.xlane.f32.xlu1 %v487_v28  ;;  %518 = vadd.xlane.f32.xlu0 %v517_v13  ;;  %v165_v56 = vpop.xlane.xlu0 %164  ;;  %v2560_v13 = vpop.xlane.xlu1 %155  ;;  %v363_v0 = vmul.f32 1.442695, %v2547_v25 }
  0xc9   :  { %1591 = vpow2.f32 %v385_v62  ;;  %v2550_v32 = vsub.f32 %v2158_v60, %v165_v56 }
  0xca   :  { %v2554_v39 = vpop.eup %1577 }
  0xcb   :  { %3739 = vst [vmem:[#allocation32_spill] sm:$0xff] %v2550_v32  ;;  %3740 = vst [vmem:[#allocation33_spill] sm:$0xff] %v2554_v39  ;;  %v389_v55 = vmul.f32 1.442695, %v2550_v32  ;;  %v523_v28 = vsel %vm72_vm0, %v2554_v39, 0.0  ;;  %v2562_v33 = vpop.eup %1579  ;;  %v2574_v32 = vsub.f32 %v2074_v36, %v2462_v2 }
  0xcc   :  { %491 = vadd.xlane.f32.xlu1 %v490_v54  ;;  %524 = vadd.xlane.f32.xlu0 %v523_v28  ;;  %v171_v60 = vpop.xlane.xlu0 %170  ;;  %v2565_v62 = vpop.eup %1581  ;;  %v493_v54 = vsel %vm72_vm0, %v2562_v33, 0.0 }
  0xcd   :  { %1593 = vpow2.f32 %v389_v55  ;;  %v2568_v56 = vsub.f32 %v2172_v3, %v171_v60  ;;  %v2583_v55 = vsub.f32 %v2079_v37, %v2470_v5  ;;  %v496_v2 = vsel %vm72_vm0, %v2565_v62, 0.0 }
  0xce   :  { %v2570_v48 = vpop.eup %1583  ;;  %1595 = vpow2.f32 %v361_v29  ;;  %v2590_v29 = vpop.xlane.xlu1 %161 }
  0xcf   :  { %3741 = vst [vmem:[#allocation34_spill] sm:$0xff] %v2568_v56  ;;  %3742 = vst [vmem:[#allocation35_spill] sm:$0xff] %v2570_v48  ;;  %v393_v39 = vmul.f32 1.442695, %v2568_v56  ;;  %v529_v28 = vsel %vm72_vm0, %v2570_v48, 0.0  ;;  %1597 = vpow2.f32 %v363_v0 }
  0xd0   :  { %494 = vadd.xlane.f32.xlu1 %v493_v54  ;;  %530 = vadd.xlane.f32.xlu0 %v529_v28  ;;  %v177_v3 = vpop.xlane.xlu0 %176  ;;  %v365_v0 = vmul.f32 1.442695, %v2574_v32  ;;  %v367_v5 = vmul.f32 1.442695, %v2583_v55 }
  0xd1   :  { %1599 = vpow2.f32 %v393_v39  ;;  %v2586_v36 = vsub.f32 %v2186_v10, %v177_v3  ;;  %v2603_v39 = vsub.f32 %v2093_v41, %v2494_v24  ;;  %v2622_v24 = vsub.f32 %v2107_v45, %v2512_v40 }
  0xd2   :  { %v2592_v60 = vpop.eup %1585  ;;  %v2617_v48 = vpop.xlane.xlu1 %167 }
  0xd3   :  { %3743 = vst [vmem:[#allocation36_spill] sm:$0xff] %v2586_v36  ;;  %3744 = vst [vmem:[#allocation37_spill] sm:$0xff] %v2592_v60  ;;  %v397_v54 = vmul.f32 1.442695, %v2586_v36  ;;  %v535_v28 = vsel %vm72_vm0, %v2592_v60, 0.0  ;;  %v2598_v37 = vpop.eup %1587 }
  0xd4   :  { %497 = vadd.xlane.f32.xlu1 %v496_v2  ;;  %536 = vadd.xlane.f32.xlu0 %v535_v28  ;;  %v183_v10 = vpop.xlane.xlu0 %182  ;;  %v2605_v3 = vpop.eup %1589  ;;  %v499_v2 = vsel %vm72_vm0, %v2598_v37, 0.0  ;;  %v375_v40 = vmul.f32 1.442695, %v2622_v24 }
  0xd5   :  { %1601 = vpow2.f32 %v397_v54  ;;  %v2608_v56 = vsub.f32 %v2200_v18, %v183_v10  ;;  %v371_v18 = vmul.f32 1.442695, %v2603_v39  ;;  %v502_v54 = vsel %vm72_vm0, %v2605_v3, 0.0 }
  0xd6   :  { %v2610_v36 = vpop.eup %1591  ;;  %1603 = vpow2.f32 %v365_v0 }
  0xd7   :  { %3745 = vst [vmem:[#allocation38_spill] sm:$0xff] %v2608_v56  ;;  %v401_v60 = vmul.f32 1.442695, %v2608_v56  ;;  %v541_v28 = vsel %vm72_vm0, %v2610_v36, 0.0  ;;  %1605 = vpow2.f32 %v367_v5 }
  0xd8   :  { %500 = vadd.xlane.f32.xlu1 %v499_v2  ;;  %542 = vadd.xlane.f32.xlu0 %v541_v28  ;;  %v189_v41 = vpop.xlane.xlu0 %188 }
  0xd9   :  { %1607 = vpow2.f32 %v401_v60  ;;  %v2625_v0 = vsub.f32 %v2214_v26, %v189_v41  ;;  %v2639_v26 = vsub.f32 %v2121_v49, %v2532_v52  ;;  %v174_v41 = vpop.xlane.xlu1 %173 }
  0xda   :  { %v2629_v10 = vpop.eup %1593  ;;  %1609 = vpow2.f32 %v371_v18 }
  0xdb   :  { %3746 = vst [vmem:[#allocation39_spill] sm:$0xff] %v2625_v0  ;;  %v2631_v56 = vpop.eup %1595  ;;  %v405_v5 = vmul.f32 1.442695, %v2625_v0  ;;  %v547_v2 = vsel %vm72_vm0, %v2629_v10, 0.0  ;;  %v379_v52 = vmul.f32 1.442695, %v2639_v26 }
  0xdc   :  { %503 = vadd.xlane.f32.xlu1 %v502_v54  ;;  %548 = vadd.xlane.f32.xlu0 %v547_v2  ;;  %v195_v45 = vpop.xlane.xlu0 %194  ;;  %v2641_v60 = vpop.eup %1597  ;;  %v505_v54 = vsel %vm72_vm0, %v2631_v56, 0.0 }
  0xdd   :  { %1611 = vpow2.f32 %v405_v5  ;;  %v2644_v28 = vsub.f32 %v2228_v34, %v195_v45  ;;  %v2656_v34 = vsub.f32 %v2135_v53, %v2560_v13  ;;  %v508_v45 = vsel %vm72_vm0, %v2641_v60, 0.0 }
  0xde   :  { %v2646_v0 = vpop.eup %1599  ;;  %1613 = vpow2.f32 %v375_v40  ;;  %v2673_v13 = vsub.f32 %v2149_v57, %v2590_v29 }
  0xdf   :  { %3747 = vst [vmem:[#allocation40_spill] sm:$0xff] %v2644_v28  ;;  %3748 = vst [vmem:[#allocation41_spill] sm:$0xff] %v2646_v0  ;;  %v409_v18 = vmul.f32 1.442695, %v2644_v28  ;;  %v553_v2 = vsel %vm72_vm0, %v2646_v0, 0.0 }
  0xe0   :  { %506 = vadd.xlane.f32.xlu1 %v505_v54  ;;  %554 = vadd.xlane.f32.xlu0 %v553_v2  ;;  %v201_v49 = vpop.xlane.xlu0 %200  ;;  %v180_v2 = vpop.xlane.xlu1 %179  ;;  %v387_v29 = vmul.f32 1.442695, %v2673_v13 }
  0xe1   :  { %1615 = vpow2.f32 %v409_v18  ;;  %v2659_v5 = vsub.f32 %v2242_v42, %v201_v49  ;;  %v383_v42 = vmul.f32 1.442695, %v2656_v34 }
  0xe2   :  { %v2663_v28 = vpop.eup %1601  ;;  %1617 = vpow2.f32 %v379_v52 }
  0xe3   :  { %3749 = vst [vmem:[#allocation42_spill] sm:$0xff] %v2659_v5  ;;  %3750 = vst [vmem:[#allocation43_spill] sm:$0xff] %v2663_v28  ;;  %v413_v40 = vmul.f32 1.442695, %v2659_v5  ;;  %v559_v54 = vsel %vm72_vm0, %v2663_v28, 0.0  ;;  %v2668_v0 = vpop.eup %1603 }
  0xe4   :  { %509 = vadd.xlane.f32.xlu1 %v508_v45  ;;  %560 = vadd.xlane.f32.xlu0 %v559_v54  ;;  %v207_v53 = vpop.xlane.xlu0 %206  ;;  %v2675_v18 = vpop.eup %1605  ;;  %v511_v52 = vsel %vm72_vm0, %v2668_v0, 0.0 }
  0xe5   :  { %1619 = vpow2.f32 %v413_v40  ;;  %v2678_v49 = vsub.f32 %v2256_v50, %v207_v53  ;;  %v514_v54 = vsel %vm72_vm0, %v2675_v18, 0.0  ;;  %v2697_v53 = vsub.f32 %v2163_v61, %v2617_v48 }
  0xe6   :  { %v2680_v5 = vpop.eup %1607  ;;  %1621 = vpow2.f32 %v383_v42 }
  0xe7   :  { %3751 = vst [vmem:[#allocation44_spill] sm:$0xff] %v2678_v49  ;;  %3752 = vst [vmem:[#allocation45_spill] sm:$0xff] %v2680_v5  ;;  %v417_v28 = vmul.f32 1.442695, %v2678_v49  ;;  %v565_v45 = vsel %vm72_vm0, %v2680_v5, 0.0  ;;  %v2688_v40 = vpop.eup %1609  ;;  %v186_v49 = vpop.xlane.xlu1 %185 }
  0xe8   :  { %512 = vadd.xlane.f32.xlu1 %v511_v52  ;;  %566 = vadd.xlane.f32.xlu0 %v565_v45  ;;  %v213_v57 = vpop.xlane.xlu0 %212  ;;  %3754 = vst [vmem:[#allocation47_spill] sm:$0xff] %v2697_v53  ;;  %v391_v61 = vmul.f32 1.442695, %v2697_v53  ;;  %v520_v48 = vsel %vm72_vm0, %v2688_v40, 0.0 }
  0xe9   :  { %1623 = vpow2.f32 %v417_v28  ;;  %v2691_v50 = vsub.f32 %v2270_v58, %v213_v57  ;;  %v2707_v28 = vsub.f32 %v2177_v4, %v174_v41  ;;  %v2720_v41 = vsub.f32 %v2191_v11, %v180_v2 }
  0xea   :  { %v2699_v42 = vpop.eup %1611  ;;  %1625 = vpow2.f32 %v387_v29 }
  0xeb   :  { %3753 = vst [vmem:[#allocation46_spill] sm:$0xff] %v2691_v50  ;;  %3755 = vst [vmem:[#allocation48_spill] sm:$0xff] %v2699_v42  ;;  %v421_v52 = vmul.f32 1.442695, %v2691_v50  ;;  %v571_v45 = vsel %vm72_vm0, %v2699_v42, 0.0  ;;  %v2709_v57 = vpop.eup %1613 }
  0xec   :  { %515 = vadd.xlane.f32.xlu1 %v514_v54  ;;  %572 = vadd.xlane.f32.xlu0 %v571_v45  ;;  %v2704_v58 = vpop.xlane.xlu0 %215  ;;  %v192_v54 = vpop.xlane.xlu1 %191  ;;  %v395_v4 = vmul.f32 1.442695, %v2707_v28  ;;  %v526_v5 = vsel %vm72_vm0, %v2709_v57, 0.0  ;;  %v399_v2 = vmul.f32 1.442695, %v2720_v41 }
  0xed   :  { %1627 = vpow2.f32 %v421_v52 }
  0xee   :  { %v2714_v50 = vpop.eup %1615  ;;  %1629 = vpow2.f32 %v391_v61  ;;  %v2736_v61 = vsub.f32 %v2205_v19, %v186_v49 }
  0xef   :  { %3756 = vst [vmem:[#allocation49_spill] sm:$0xff] %v2714_v50  ;;  %v577_v29 = vsel %vm72_vm0, %v2714_v50, 0.0  ;;  %v2722_v52 = vpop.eup %1617  ;;  %1631 = vpow2.f32 %v395_v4 }
  0xf0   :  { %521 = vadd.xlane.f32.xlu1 %v520_v48  ;;  %578 = vadd.xlane.f32.xlu0 %v577_v29  ;;  %v219_v45 = vpop.xlane.xlu0 %218  ;;  %3759 = vst [vmem:[#allocation52_spill] sm:$0xff] %v2736_v61  ;;  %v198_v50 = vpop.xlane.xlu1 %197  ;;  %v403_v49 = vmul.f32 1.442695, %v2736_v61 }
  0xf1   :  { %v2725_v42 = vsub.f32 %v2284_v6, %v219_v45 }
  0xf2   :  { %v2729_v53 = vpop.eup %1619 }
  0xf3   :  { %3757 = vst [vmem:[#allocation50_spill] sm:$0xff] %v2725_v42  ;;  %3758 = vst [vmem:[#allocation51_spill] sm:$0xff] %v2729_v53  ;;  %v425_v48 = vmul.f32 1.442695, %v2725_v42  ;;  %v583_v29 = vsel %vm72_vm0, %v2729_v53, 0.0  ;;  %v2738_v6 = vpop.eup %1621  ;;  %v532_v42 = vsel %vm72_vm0, %v2722_v52, 0.0 }
  0xf4   :  { %527 = vadd.xlane.f32.xlu1 %v526_v5  ;;  %584 = vadd.xlane.f32.xlu0 %v583_v29  ;;  %v222_v11 = vpop.xlane.xlu0 %221 }
  0xf5   :  { %1633 = vpow2.f32 %v425_v48  ;;  %v2741_v45 = vsub.f32 %v2291_v14, %v222_v11  ;;  %v2752_v14 = vsub.f32 %v2219_v27, %v192_v54  ;;  %v538_v11 = vsel %vm72_vm0, %v2738_v6, 0.0 }
  0xf6   :  { %v2745_v53 = vpop.eup %1623  ;;  %1635 = vpow2.f32 %v399_v2 }
  0xf7   :  { %3760 = vst [vmem:[#allocation53_spill] sm:$0xff] %v2741_v45  ;;  %3761 = vst [vmem:[#allocation54_spill] sm:$0xff] %v2745_v53  ;;  %v427_v5 = vmul.f32 1.442695, %v2741_v45  ;;  %v589_v4 = vsel %vm72_vm0, %v2745_v53, 0.0  ;;  %v2754_v48 = vpop.eup %1625 }
  0xf8   :  { %533 = vadd.xlane.f32.xlu1 %v532_v42  ;;  %590 = vadd.xlane.f32.xlu0 %v589_v4  ;;  %v225_v19 = vpop.xlane.xlu0 %224  ;;  %3762 = vst [vmem:[#allocation55_spill] sm:$0xff] %v2752_v14  ;;  %v204_v4 = vpop.xlane.xlu1 %203  ;;  %v407_v54 = vmul.f32 1.442695, %v2752_v14 }
  0xf9   :  { %1637 = vpow2.f32 %v427_v5  ;;  %v2757_v29 = vsub.f32 %v2298_v22, %v225_v19  ;;  %v2768_v22 = vsub.f32 %v2233_v35, %v198_v50  ;;  %v544_v19 = vsel %vm72_vm0, %v2754_v48, 0.0 }
  0xfa   :  { %v2761_v45 = vpop.eup %1627  ;;  %1639 = vpow2.f32 %v403_v49 }
  0xfb   :  { %3763 = vst [vmem:[#allocation56_spill] sm:$0xff] %v2757_v29  ;;  %3764 = vst [vmem:[#allocation57_spill] sm:$0xff] %v2761_v45  ;;  %v429_v42 = vmul.f32 1.442695, %v2757_v29  ;;  %v595_v2 = vsel %vm72_vm0, %v2761_v45, 0.0  ;;  %v2775_v29 = vpop.eup %1629 }
  0xfc   :  { %539 = vadd.xlane.f32.xlu1 %v538_v11  ;;  %596 = vadd.xlane.f32.xlu0 %v595_v2  ;;  %v228_v27 = vpop.xlane.xlu0 %227  ;;  %3765 = vst [vmem:[#allocation58_spill] sm:$0xff] %v2768_v22  ;;  %v411_v11 = vmul.f32 1.442695, %v2768_v22  ;;  %v2780_v2 = vsub.f32 %v2247_v43, %v204_v4  ;;  %v2782_v35 = vpop.eup %1631  ;;  %v550_v50 = vsel %vm72_vm0, %v2775_v29, 0.0 }
  0xfd   :  { %1641 = vpow2.f32 %v429_v42  ;;  %v2771_v5 = vsub.f32 %v2305_v30, %v228_v27  ;;  %v210_v42 = vpop.xlane.xlu1 %209 }
  0xfe   :  { %1643 = vpow2.f32 %v407_v54  ;;  %3767 = vst [vmem:[#allocation60_spill] sm:$0xff] %v2780_v2 }
  0xff   :  { %3766 = vst [vmem:[#allocation59_spill] sm:$0xff] %v2771_v5  ;;  %v431_v45 = vmul.f32 1.442695, %v2771_v5 }
 0x100   :  { %545 = vadd.xlane.f32.xlu1 %v544_v19  ;;  %v231_v49 = vpop.xlane.xlu0 %230 }
 0x101   :  { %1645 = vpow2.f32 %v431_v45  ;;  %v2785_v30 = vsub.f32 %v2312_v38, %v231_v49  ;;  %v415_v45 = vmul.f32 1.442695, %v2780_v2  ;;  %v2796_v38 = vsub.f32 %v2261_v51, %v210_v42 }
 0x102   :  { %v2789_v27 = vpop.eup %1633  ;;  %1647 = vpow2.f32 %v411_v11 }
 0x103   :  { %3768 = vst [vmem:[#allocation61_spill] sm:$0xff] %v2785_v30  ;;  %3769 = vst [vmem:[#allocation62_spill] sm:$0xff] %v2789_v27  ;;  %v433_v54 = vmul.f32 1.442695, %v2785_v30  ;;  %v601_v19 = vsel %vm72_vm0, %v2789_v27, 0.0  ;;  %v2798_v4 = vpop.eup %1635  ;;  %v556_v30 = vsel %vm72_vm0, %v2782_v35, 0.0 }
 0x104   :  { %551 = vadd.xlane.f32.xlu1 %v550_v50  ;;  %602 = vadd.xlane.f32.xlu0 %v601_v19  ;;  %v234_v43 = vpop.xlane.xlu0 %233  ;;  %3770 = vst [vmem:[#allocation63_spill] sm:$0xff] %v2796_v38  ;;  %3771 = vst [vmem:[#allocation64_spill] sm:$0xff] %v2798_v4  ;;  %v419_v42 = vmul.f32 1.442695, %v2796_v38 }
 0x105   :  { %1649 = vpow2.f32 %v433_v54  ;;  %v2801_v49 = vsub.f32 %v2319_v46, %v234_v43  ;;  %v3775_v46 = vld [vmem:[#allocation3_spill] sm:$0xff]  ;;  %v562_v43 = vsel %vm72_vm0, %v2798_v4, 0.0 }
 0x106   :  { %v2805_v5 = vpop.eup %1637  ;;  %1651 = vpow2.f32 %v415_v45 }
 0x107   :  { %3772 = vst [vmem:[#allocation65_spill] sm:$0xff] %v2801_v49  ;;  %3773 = vst [vmem:[#allocation66_spill] sm:$0xff] %v2805_v5  ;;  %v435_v11 = vmul.f32 1.442695, %v2801_v49  ;;  %v604_v50 = vsel %vm72_vm0, %v2805_v5, 0.0  ;;  %v2811_v54 = vpop.eup %1639  ;;  %v3778_v49 = vld [vmem:[#allocation2_spill] sm:$0xff] }
 0x108   :  { %557 = vadd.xlane.f32.xlu1 %v556_v30  ;;  %605 = vadd.xlane.f32.xlu0 %v604_v50  ;;  %v237_v51 = vpop.xlane.xlu0 %236  ;;  %3774 = vst [vmem:[#allocation67_spill] sm:$0xff] %v2811_v54  ;;  %v2822_v5 = vsub.f32 %v3778_v49, %v2704_v58  ;;  %v568_v38 = vsel %vm72_vm0, %v2811_v54, 0.0 }
 0x109   :  { %1653 = vpow2.f32 %v435_v11  ;;  %v2814_v19 = vsub.f32 %v3775_v46, %v237_v51  ;;  %v3781_v51 = vld [vmem:[#allocation4_spill] sm:$0xff] }
 0x10a   :  { %v2818_v27 = vpop.eup %1641  ;;  %3779 = vst [vmem:[#allocation2_spill] sm:$0xff] %v2822_v5  ;;  %1655 = vpow2.f32 %v419_v42  ;;  %v423_v49 = vmul.f32 1.442695, %v2822_v5 }
 0x10b   :  { %3776 = vst [vmem:[#allocation3_spill] sm:$0xff] %v2814_v19  ;;  %3777 = vst [vmem:[#allocation68_spill] sm:$0xff] %v2818_v27  ;;  %v437_v30 = vmul.f32 1.442695, %v2814_v19  ;;  %v607_v45 = vsel %vm72_vm0, %v2818_v27, 0.0  ;;  %v2827_v50 = vpop.eup %1643 }
 0x10c   :  { %563 = vadd.xlane.f32.xlu1 %v562_v43  ;;  %608 = vadd.xlane.f32.xlu0 %v607_v45  ;;  %v240_v11 = vpop.xlane.xlu0 %239  ;;  %3780 = vst [vmem:[#allocation69_spill] sm:$0xff] %v2827_v50 }
 0x10d   :  { %1657 = vpow2.f32 %v437_v30  ;;  %v2830_v46 = vsub.f32 %v3781_v51, %v240_v11  ;;  %v574_v30 = vsel %vm72_vm0, %v2827_v50, 0.0  ;;  %v3804_v50 = vld [vmem:[#allocation11_spill] sm:$0xff] }
 0x10e   :  { %v2834_v58 = vpop.eup %1645 }
 0x10f   :  { %3782 = vst [vmem:[#allocation4_spill] sm:$0xff] %v2830_v46  ;;  %3783 = vst [vmem:[#allocation70_spill] sm:$0xff] %v2834_v58  ;;  %v439_v19 = vmul.f32 1.442695, %v2830_v46  ;;  %v610_v42 = vsel %vm72_vm0, %v2834_v58, 0.0  ;;  %v2840_v45 = vpop.eup %1647 }
 0x110   :  { %569 = vadd.xlane.f32.xlu1 %v568_v38  ;;  %611 = vadd.xlane.f32.xlu0 %v610_v42  ;;  %v243_v43 = vpop.xlane.xlu0 %242  ;;  %3784 = vst [vmem:[#allocation71_spill] sm:$0xff] %v2840_v45  ;;  %v580_v38 = vsel %vm72_vm0, %v2840_v45, 0.0 }
 0x111   :  { %1659 = vpow2.f32 %v439_v19 }
 0x112   :  { %v2844_v11 = vpop.eup %1649  ;;  %1661 = vpow2.f32 %v423_v49 }
 0x113   :  { %3785 = vst [vmem:[#allocation72_spill] sm:$0xff] %v2844_v11  ;;  %v613_v51 = vsel %vm72_vm0, %v2844_v11, 0.0  ;;  %v2848_v27 = vpop.eup %1651 }
 0x114   :  { %575 = vadd.xlane.f32.xlu1 %v574_v30  ;;  %614 = vadd.xlane.f32.xlu0 %v613_v51  ;;  %v246_v46 = vpop.xlane.xlu0 %245  ;;  %3786 = vst [vmem:[#allocation73_spill] sm:$0xff] %v2848_v27  ;;  %v586_v30 = vsel %vm72_vm0, %v2848_v27, 0.0 }
 0x116   :  { %v2852_v42 = vpop.eup %1653 }
 0x117   :  { %3787 = vst [vmem:[#allocation74_spill] sm:$0xff] %v2852_v42  ;;  %v616_v19 = vsel %vm72_vm0, %v2852_v42, 0.0  ;;  %v2856_v49 = vpop.eup %1655 }
 0x118   :  { %581 = vadd.xlane.f32.xlu1 %v580_v38  ;;  %617 = vadd.xlane.f32.xlu0 %v616_v19  ;;  %v249_v58 = vpop.xlane.xlu0 %248  ;;  %3788 = vst [vmem:[#allocation75_spill] sm:$0xff] %v2856_v49  ;;  %v592_v2 = vsel %vm72_vm0, %v2856_v49, 0.0  ;;  %v3793_v49 = vld [vmem:[#allocation5_spill] sm:$0xff] }
 0x119   :  { %v2879_v53 = vsub.f32 %v3793_v49, %v243_v43  ;;  %v3800_v49 = vld [vmem:[#allocation7_spill] sm:$0xff] }
 0x11a   :  { %v2860_v51 = vpop.eup %1657 }
 0x11b   :  { %3789 = vst [vmem:[#allocation76_spill] sm:$0xff] %v2860_v51  ;;  %v619_v11 = vsel %vm72_vm0, %v2860_v51, 0.0  ;;  %3794 = vst [vmem:[#allocation5_spill] sm:$0xff] %v2879_v53 }
 0x11c   :  { %587 = vadd.xlane.f32.xlu1 %v586_v30  ;;  %620 = vadd.xlane.f32.xlu0 %v619_v11  ;;  %v252_v5 = vpop.xlane.xlu0 %251 }
 0x11e   :  { %v2866_v42 = vpop.eup %1659 }
 0x11f   :  { %3790 = vst [vmem:[#allocation77_spill] sm:$0xff] %v2866_v42  ;;  %v622_v38 = vsel %vm72_vm0, %v2866_v42, 0.0  ;;  %v2870_v19 = vpop.eup %1661 }
 0x120   :  { %3791 = vst [vmem:[#allocation78_spill] sm:$0xff] %v2870_v19  ;;  %593 = vadd.xlane.f32.xlu1 %v592_v2  ;;  %623 = vadd.xlane.f32.xlu0 %v622_v38  ;;  %v255_v27 = vpop.xlane.xlu0 %254  ;;  %v598_v45 = vsel %vm72_vm0, %v2870_v19, 0.0  ;;  %v441_v2 = vmul.f32 1.442695, %v2879_v53 }
 0x124   :  { %599 = vadd.xlane.f32.xlu1 %v598_v45  ;;  %v258_v30 = vpop.xlane.xlu0 %257  ;;  %v3797_v45 = vld [vmem:[#allocation6_spill] sm:$0xff] }
 0x125   :  { %v2890_v42 = vsub.f32 %v3797_v45, %v246_v46 }
 0x127   :  { %3798 = vst [vmem:[#allocation6_spill] sm:$0xff] %v2890_v42  ;;  %v443_v43 = vmul.f32 1.442695, %v2890_v42  ;;  %v2908_v42 = vsub.f32 %v3804_v50, %v255_v27 }
 0x128   :  { %v2874_v11 = vpop.xlane.xlu0 %260 }
 0x129   :  { %3805 = vst [vmem:[#allocation11_spill] sm:$0xff] %v2908_v42  ;;  %v449_v27 = vmul.f32 1.442695, %v2908_v42  ;;  %v3814_v42 = vld [vmem:[#allocation9_spill] sm:$0xff] }
 0x12c   :  { %v2876_v51 = vpop.xlane.xlu0 %458 }
 0x12d   :  { %3792 = vst [vmem:[#allocation79_spill] sm:$0xff] %v2876_v51  ;;  %v2881_v22 = vpop.xlane.xlu1 %461  ;;  %1663 = vlog2.f32 %v2876_v51  ;;  %v2897_v51 = vsub.f32 %v3800_v49, %v249_v58 }
 0x12e   :  { %3795 = vst [vmem:[#allocation80_spill] sm:$0xff] %v2881_v22  ;;  %1665 = vlog2.f32 %v2881_v22  ;;  %v2900_v22 = vsub.f32 %v2364_v15, %v252_v5  ;;  %v3807_v5 = vld [vmem:[#allocation8_spill] sm:$0xff] }
 0x12f   :  { %3801 = vst [vmem:[#allocation7_spill] sm:$0xff] %v2897_v51  ;;  %v445_v46 = vmul.f32 1.442695, %v2897_v51 }
 0x130   :  { %3802 = vst [vmem:[#allocation83_spill] sm:$0xff] %v2900_v22 }
 0x131   :  { %v2886_v38 = vpop.xlane.xlu1 %464 }
 0x132   :  { %3796 = vst [vmem:[#allocation81_spill] sm:$0xff] %v2886_v38  ;;  %1667 = vlog2.f32 %v2886_v38 }
 0x133   :  { %1669 = vpow2.f32 %v441_v2 }
 0x135   :  { %v2892_v19 = vpop.xlane.xlu1 %467 }
 0x136   :  { %3799 = vst [vmem:[#allocation82_spill] sm:$0xff] %v2892_v19  ;;  %1671 = vlog2.f32 %v2892_v19  ;;  %v447_v19 = vmul.f32 1.442695, %v2900_v22  ;;  %v3810_v22 = vld [vmem:[#allocation10_spill] sm:$0xff] }
 0x139   :  { %v2902_v53 = vpop.xlane.xlu1 %470 }
 0x13a   :  { %3803 = vst [vmem:[#allocation84_spill] sm:$0xff] %v2902_v53  ;;  %1673 = vlog2.f32 %v2902_v53  ;;  %v1664_v38 = vpop.eup %1663 }
 0x13b   :  { %1675 = vpow2.f32 %v443_v43  ;;  %v650_v2 = vmul.f32 0.6931472, %v1664_v38  ;;  %v1666_v45 = vpop.eup %1665  ;;  %v3808_v38 = vld [vmem:[#allocation17_spill] sm:$0xff] }
 0x13c   :  { %v652_v49 = vmul.f32 0.6931472, %v1666_v45 }
 0x13d   :  { %v2910_v58 = vpop.xlane.xlu1 %473  ;;  %v905_v15 = vadd.f32 -13.815511, %v650_v2  ;;  %v1033_v14 = vsub.f32 %v3807_v5, %v650_v2 }
 0x13e   :  { %3806 = vst [vmem:[#allocation85_spill] sm:$0xff] %v2910_v58  ;;  %1677 = vlog2.f32 %v2910_v58  ;;  %v906_v54 = vadd.f32 -13.815511, %v652_v49  ;;  %v1034_v45 = vsub.f32 %v3810_v22, %v652_v49 }
 0x13f   :  { %v1668_v53 = vpop.eup %1667  ;;  %1679 = vpow2.f32 %v445_v46  ;;  %vm969_vm1 = vcmp.ge.f32.partialorder %v3807_v5, %v905_v15  ;;  %v1097_v51 = vmul.f32 %v3808_v38, %v1033_v14  ;;  %v3811_v15 = vld [vmem:[#allocation13_spill] sm:$0xff] }
 0x140   :  { %v654_v43 = vmul.f32 0.6931472, %v1668_v53  ;;  %1681 = vpow2.f32 %v447_v19  ;;  %v2920_v61 = vpop.eup %1669  ;;  %vm970_vm2 = vcmp.ge.f32.partialorder %v3810_v22, %v906_v54  ;;  %v2925_v5 = vsub.f32 %v3811_v15, %v258_v30  ;;  %v3813_v19 = vld [vmem:[#allocation22_spill] sm:$0xff]  ;;  %v3815_v54 = vld [vmem:[#allocation19_spill] sm:$0xff] }
 0x141   :  { %v2917_v50 = vpop.xlane.xlu1 %476  ;;  %v1161_v2 = vsel %vm969_vm1, %v1097_v51, 0.0  ;;  %v1098_v38 = vmul.f32 %v3813_v19, %v1034_v45  ;;  %v625_v22 = vsel %vm72_vm0, %v2920_v61, 0.0  ;;  %v3816_v45 = vld [vmem:[#allocation12_spill] sm:$0xff] }
 0x142   :  { %3809 = vst [vmem:[#allocation8_spill] sm:$0xff] %v2917_v50  ;;  %1683 = vlog2.f32 %v2917_v50  ;;  %v907_v53 = vadd.f32 -13.815511, %v654_v43  ;;  %3812 = vst [vmem:[#allocation17_spill] sm:$0xff] %v2925_v5  ;;  %v1225_v14 = vsel %vm72_vm0, %v1161_v2, 0.0  ;;  %v1035_v58 = vsub.f32 %v3814_v42, %v654_v43 }
 0x143   :  { %v1672_v46 = vpop.eup %1671  ;;  %1226 = vadd.xlane.f32.xlu0 %v1225_v14  ;;  %v1162_v49 = vsel %vm970_vm2, %v1098_v38, 0.0 }
 0x144   :  { %v656_v4 = vmul.f32 0.6931472, %v1672_v46  ;;  %vm971_vm3 = vcmp.ge.f32.partialorder %v3814_v42, %v907_v53  ;;  %v1099_v51 = vmul.f32 %v3815_v54, %v1035_v58  ;;  %v1228_v30 = vsel %vm72_vm0, %v1162_v49, 0.0  ;;  %v3817_v42 = vld [vmem:[#allocation15_spill] sm:$0xff]  ;;  %v264_v49 = vpop.xlane.xlu0 %263  ;;  %v3820_v54 = vld [vmem:[#allocation21_spill] sm:$0xff] }
 0x145   :  { %v2931_v50 = vpop.xlane.xlu1 %479  ;;  %v451_v46 = vmul.f32 1.442695, %v2925_v5  ;;  %v2942_v53 = vsub.f32 %v3817_v42, %v2874_v11  ;;  %1229 = vadd.xlane.f32.xlu1 %v1228_v30  ;;  %v2952_v5 = vsub.f32 %v3820_v54, %v264_v49  ;;  %v3822_v30 = vld [vmem:[#allocation14_spill] sm:$0xff] }
 0x146   :  { %1685 = vlog2.f32 %v2931_v50  ;;  %v908_v2 = vadd.f32 -13.815511, %v656_v4  ;;  %v1036_v15 = vsub.f32 %v3816_v45, %v656_v4  ;;  %v1163_v14 = vsel %vm971_vm3, %v1099_v51, 0.0 }
 0x147   :  { %v1674_v43 = vpop.eup %1673  ;;  %1687 = vpow2.f32 %v449_v27  ;;  %3818 = vst [vmem:[#allocation10_spill] sm:$0xff] %v2942_v53  ;;  %626 = vadd.xlane.f32.xlu0 %v625_v22  ;;  %v1231_v38 = vsel %vm72_vm0, %v1163_v14, 0.0  ;;  %3821 = vst [vmem:[#allocation22_spill] sm:$0xff] %v2952_v5  ;;  %v453_v22 = vmul.f32 1.442695, %v2942_v53  ;;  %v3823_v14 = vld [vmem:[#allocation25_spill] sm:$0xff] }
 0x148   :  { %v2944_v19 = vpop.eup %1675  ;;  %v658_v58 = vmul.f32 0.6931472, %v1674_v43  ;;  %vm972_vm4 = vcmp.ge.f32.partialorder %v3816_v45, %v908_v2  ;;  %v1100_v4 = vmul.f32 %v2437_v47, %v1036_v15  ;;  %v3824_v53 = vld [vmem:[#allocation16_spill] sm:$0xff] }
 0x149   :  { %v2949_v27 = vpop.xlane.xlu1 %482  ;;  %1232 = vadd.xlane.f32.xlu1 %v1231_v38  ;;  %v628_v47 = vsel %vm72_vm0, %v2944_v19, 0.0 }
 0x14a   :  { %3819 = vst [vmem:[#allocation13_spill] sm:$0xff] %v2949_v27  ;;  %1689 = vlog2.f32 %v2949_v27  ;;  %v1164_v11 = vsel %vm972_vm4, %v1100_v4, 0.0  ;;  %v909_v51 = vadd.f32 -13.815511, %v658_v58  ;;  %v1037_v42 = vsub.f32 %v3822_v30, %v658_v58 }
 0x14b   :  { %v1678_v43 = vpop.eup %1677  ;;  %1691 = vpow2.f32 %v451_v46  ;;  %629 = vadd.xlane.f32.xlu0 %v628_v47  ;;  %v1234_v15 = vsel %vm72_vm0, %v1164_v11, 0.0  ;;  %v455_v46 = vmul.f32 1.442695, %v2952_v5 }
 0x14c   :  { %v2959_v2 = vpop.eup %1679  ;;  %v660_v45 = vmul.f32 0.6931472, %v1678_v43  ;;  %vm973_vm5 = vcmp.ge.f32.partialorder %v3822_v30, %v909_v51  ;;  %v1101_v4 = vmul.f32 %v3823_v14, %v1037_v42 }
 0x14d   :  { %v2964_v49 = vpop.xlane.xlu1 %485  ;;  %v2967_v58 = vpop.eup %1681  ;;  %1235 = vadd.xlane.f32.xlu1 %v1234_v15  ;;  %v631_v11 = vsel %vm72_vm0, %v2959_v2, 0.0  ;;  %v3827_v15 = vld [vmem:[#allocation18_spill] sm:$0xff] }
 0x14e   :  { %1693 = vlog2.f32 %v2964_v49  ;;  %v1165_v38 = vsel %vm973_vm5, %v1101_v4, 0.0  ;;  %v910_v54 = vadd.f32 -13.815511, %v660_v45  ;;  %v1038_v27 = vsub.f32 %v3824_v53, %v660_v45 }
 0x14f   :  { %v1684_v43 = vpop.eup %1683  ;;  %1695 = vpow2.f32 %v453_v22  ;;  %632 = vadd.xlane.f32.xlu0 %v631_v11  ;;  %v1237_v30 = vsel %vm72_vm0, %v1165_v38, 0.0  ;;  %v634_v38 = vsel %vm72_vm0, %v2967_v58, 0.0 }
 0x150   :  { %v662_v51 = vmul.f32 0.6931472, %v1684_v43  ;;  %vm974_vm6 = vcmp.ge.f32.partialorder %v3824_v53, %v910_v54  ;;  %v1102_v42 = vmul.f32 %v2453_v8, %v1038_v27  ;;  %1697 = vpow2.f32 %v455_v46 }
 0x151   :  { %v2976_v47 = vpop.xlane.xlu1 %488  ;;  %v2978_v14 = vpop.xlane.xlu0 %518  ;;  %1238 = vadd.xlane.f32.xlu1 %v1237_v30  ;;  %v3831_v30 = vld [vmem:[#allocation20_spill] sm:$0xff] }
 0x152   :  { %3825 = vst [vmem:[#allocation9_spill] sm:$0xff] %v2976_v47  ;;  %3826 = vst [vmem:[#allocation19_spill] sm:$0xff] %v2978_v14  ;;  %1699 = vlog2.f32 %v2976_v47  ;;  %v1166_v22 = vsel %vm974_vm6, %v1102_v42, 0.0  ;;  %v911_v45 = vadd.f32 -13.815511, %v662_v51  ;;  %v1039_v4 = vsub.f32 %v3827_v15, %v662_v51 }
 0x153   :  { %v1686_v5 = vpop.eup %1685  ;;  %635 = vadd.xlane.f32.xlu0 %v634_v38  ;;  %v1240_v8 = vsel %vm72_vm0, %v1166_v22, 0.0 }
 0x154   :  { %v2984_v43 = vpop.eup %1687  ;;  %v664_v53 = vmul.f32 0.6931472, %v1686_v5  ;;  %vm975_vm7 = vcmp.ge.f32.partialorder %v3827_v15, %v911_v45  ;;  %v1103_v27 = vmul.f32 %v2472_v20, %v1039_v4 }
 0x155   :  { %3828 = vst [vmem:[#allocation12_spill] sm:$0xff] %v2984_v43  ;;  %v2989_v46 = vpop.xlane.xlu1 %491  ;;  %v2991_v54 = vpop.xlane.xlu0 %524  ;;  %1241 = vadd.xlane.f32.xlu1 %v1240_v8  ;;  %v637_v5 = vsel %vm72_vm0, %v2984_v43, 0.0 }
 0x156   :  { %3829 = vst [vmem:[#allocation15_spill] sm:$0xff] %v2989_v46  ;;  %3830 = vst [vmem:[#allocation21_spill] sm:$0xff] %v2991_v54  ;;  %1701 = vlog2.f32 %v2989_v46  ;;  %v1167_v11 = vsel %vm975_vm7, %v1103_v27, 0.0  ;;  %v912_v51 = vadd.f32 -13.815511, %v664_v53  ;;  %v1040_v42 = vsub.f32 %v3831_v30, %v664_v53  ;;  %v3835_v27 = vld [vmem:[#allocation23_spill] sm:$0xff] }
 0x157   :  { %v1690_v47 = vpop.eup %1689  ;;  %638 = vadd.xlane.f32.xlu0 %v637_v5  ;;  %v1243_v20 = vsel %vm72_vm0, %v1167_v11, 0.0 }
 0x158   :  { %v2997_v22 = vpop.eup %1691  ;;  %v666_v45 = vmul.f32 0.6931472, %v1690_v47  ;;  %vm976_vm8 = vcmp.ge.f32.partialorder %v3831_v30, %v912_v51  ;;  %v1104_v15 = vmul.f32 %v2478_v31, %v1040_v42 }
 0x159   :  { %3832 = vst [vmem:[#allocation14_spill] sm:$0xff] %v2997_v22  ;;  %v3002_v4 = vpop.xlane.xlu1 %494  ;;  %v3004_v38 = vpop.xlane.xlu0 %530  ;;  %1244 = vadd.xlane.f32.xlu1 %v1243_v20  ;;  %v640_v47 = vsel %vm72_vm0, %v2997_v22, 0.0 }
 0x15a   :  { %3833 = vst [vmem:[#allocation25_spill] sm:$0xff] %v3002_v4  ;;  %3834 = vst [vmem:[#allocation16_spill] sm:$0xff] %v3004_v38  ;;  %1703 = vlog2.f32 %v3002_v4  ;;  %v1168_v53 = vsel %vm976_vm8, %v1104_v15, 0.0  ;;  %v913_v8 = vadd.f32 -13.815511, %v666_v45  ;;  %v1041_v46 = vsub.f32 %v3835_v27, %v666_v45  ;;  %v3838_v4 = vld [vmem:[#allocation24_spill] sm:$0xff] }
 0x15b   :  { %v1694_v43 = vpop.eup %1693  ;;  %641 = vadd.xlane.f32.xlu0 %v640_v47  ;;  %v1246_v31 = vsel %vm72_vm0, %v1168_v53, 0.0 }
 0x15c   :  { %v3010_v11 = vpop.eup %1695  ;;  %v668_v51 = vmul.f32 0.6931472, %v1694_v43  ;;  %vm977_vm9 = vcmp.ge.f32.partialorder %v3835_v27, %v913_v8  ;;  %v1105_v30 = vmul.f32 %v2498_v17, %v1041_v46 }
 0x15d   :  { %3836 = vst [vmem:[#allocation18_spill] sm:$0xff] %v3010_v11  ;;  %v3015_v42 = vpop.xlane.xlu1 %497  ;;  %v3017_v5 = vpop.xlane.xlu0 %536  ;;  %1247 = vadd.xlane.f32.xlu1 %v1246_v31  ;;  %v643_v53 = vsel %vm72_vm0, %v3010_v11, 0.0 }
 0x15e   :  { %3837 = vst [vmem:[#allocation20_spill] sm:$0xff] %v3017_v5  ;;  %v3019_v45 = vpop.eup %1697  ;;  %1705 = vlog2.f32 %v3015_v42  ;;  %v1169_v20 = vsel %vm977_vm9, %v1105_v30, 0.0  ;;  %v914_v15 = vadd.f32 -13.815511, %v668_v51  ;;  %v1042_v22 = vsub.f32 %v3838_v4, %v668_v51 }
 0x15f   :  { %v1700_v43 = vpop.eup %1699  ;;  %644 = vadd.xlane.f32.xlu0 %v643_v53  ;;  %v1249_v17 = vsel %vm72_vm0, %v1169_v20, 0.0  ;;  %v646_v51 = vsel %vm72_vm0, %v3019_v45, 0.0 }
 0x160   :  { %v670_v8 = vmul.f32 0.6931472, %v1700_v43  ;;  %vm978_vm10 = vcmp.ge.f32.partialorder %v3838_v4, %v914_v15  ;;  %v1106_v46 = vmul.f32 %v2504_v44, %v1042_v22  ;;  %v3840_v43 = vld [vmem:[#allocation26_spill] sm:$0xff] }
 0x161   :  { %v3028_v27 = vpop.xlane.xlu1 %500  ;;  %v3030_v47 = vpop.xlane.xlu0 %542  ;;  %1250 = vadd.xlane.f32.xlu1 %v1249_v17 }
 0x162   :  { %3839 = vst [vmem:[#allocation23_spill] sm:$0xff] %v3030_v47  ;;  %1707 = vlog2.f32 %v3028_v27  ;;  %v1170_v31 = vsel %vm978_vm10, %v1106_v46, 0.0  ;;  %v915_v30 = vadd.f32 -13.815511, %v670_v8  ;;  %v1043_v53 = vsub.f32 %v3840_v43, %v670_v8 }
 0x163   :  { %v1702_v11 = vpop.eup %1701  ;;  %647 = vadd.xlane.f32.xlu0 %v646_v51  ;;  %v1252_v4 = vsel %vm72_vm0, %v1170_v31, 0.0  ;;  %1709 = vlog2.f32 %v2978_v14 }
 0x164   :  { %v672_v20 = vmul.f32 0.6931472, %v1702_v11  ;;  %vm979_vm11 = vcmp.ge.f32.partialorder %v3840_v43, %v915_v30  ;;  %v1107_v15 = vmul.f32 %v2524_v1, %v1043_v53 }
 0x165   :  { %v3039_v44 = vpop.xlane.xlu1 %503  ;;  %v3041_v22 = vpop.xlane.xlu0 %548  ;;  %1253 = vadd.xlane.f32.xlu1 %v1252_v4 }
 0x166   :  { %3841 = vst [vmem:[#allocation24_spill] sm:$0xff] %v3041_v22  ;;  %1711 = vlog2.f32 %v3039_v44  ;;  %v916_v46 = vadd.f32 -13.815511, %v672_v20  ;;  %v1044_v17 = vsub.f32 %v2465_v63, %v672_v20  ;;  %v1171_v11 = vsel %vm979_vm11, %v1107_v15, 0.0 }
 0x167   :  { %v1704_v8 = vpop.eup %1703  ;;  %v1255_v31 = vsel %vm72_vm0, %v1171_v11, 0.0 }
 0x168   :  { %v674_v51 = vmul.f32 0.6931472, %v1704_v8  ;;  %vm980_vm12 = vcmp.ge.f32.partialorder %v2465_v63, %v916_v46  ;;  %v1108_v14 = vmul.f32 %v2527_v12, %v1044_v17 }
 0x169   :  { %v3048_v30 = vpop.xlane.xlu1 %506  ;;  %v3050_v43 = vpop.xlane.xlu0 %554  ;;  %1256 = vadd.xlane.f32.xlu1 %v1255_v31 }
 0x16a   :  { %3842 = vst [vmem:[#allocation26_spill] sm:$0xff] %v3050_v43  ;;  %1713 = vlog2.f32 %v3048_v30  ;;  %v917_v1 = vadd.f32 -13.815511, %v674_v51  ;;  %v1045_v53 = vsub.f32 %v2481_v21, %v674_v51  ;;  %v1172_v4 = vsel %vm980_vm12, %v1108_v14, 0.0 }
 0x16b   :  { %v1706_v20 = vpop.eup %1705  ;;  %1715 = vlog2.f32 %v2991_v54  ;;  %v1258_v8 = vsel %vm72_vm0, %v1172_v4, 0.0 }
 0x16c   :  { %v676_v15 = vmul.f32 0.6931472, %v1706_v20  ;;  %vm981_vm13 = vcmp.ge.f32.partialorder %v2481_v21, %v917_v1  ;;  %v1109_v12 = vmul.f32 %v2562_v33, %v1045_v53 }
 0x16d   :  { %v3058_v63 = vpop.xlane.xlu1 %509  ;;  %v3060_v46 = vpop.xlane.xlu0 %560  ;;  %1259 = vadd.xlane.f32.xlu1 %v1258_v8 }
 0x16e   :  { %1717 = vlog2.f32 %v3058_v63  ;;  %v918_v17 = vadd.f32 -13.815511, %v676_v15  ;;  %v1046_v11 = vsub.f32 %v2487_v59, %v676_v15  ;;  %v1173_v14 = vsel %vm981_vm13, %v1109_v12, 0.0 }
 0x16f   :  { %v1708_v51 = vpop.eup %1707  ;;  %1719 = vlog2.f32 %v3004_v38  ;;  %v1261_v20 = vsel %vm72_vm0, %v1173_v14, 0.0 }
 0x170   :  { %v678_v31 = vmul.f32 0.6931472, %v1708_v51  ;;  %vm982_vm14 = vcmp.ge.f32.partialorder %v2487_v59, %v918_v17  ;;  %v1110_v33 = vmul.f32 %v2565_v62, %v1046_v11  ;;  %v1710_v53 = vpop.eup %1709 }
 0x171   :  { %v3068_v21 = vpop.xlane.xlu1 %512  ;;  %v3070_v1 = vpop.xlane.xlu0 %566  ;;  %1262 = vadd.xlane.f32.xlu1 %v1261_v20  ;;  %v690_v59 = vmul.f32 0.6931472, %v1710_v53 }
 0x172   :  { %1721 = vlog2.f32 %v3068_v21  ;;  %v919_v4 = vadd.f32 -13.815511, %v678_v31  ;;  %v1047_v15 = vsub.f32 %v2507_v23, %v678_v31  ;;  %v1174_v8 = vsel %vm982_vm14, %v1110_v33, 0.0 }
 0x173   :  { %v1712_v38 = vpop.eup %1711  ;;  %v1264_v51 = vsel %vm72_vm0, %v1174_v8, 0.0  ;;  %1723 = vlog2.f32 %v3017_v5 }
 0x174   :  { %v680_v12 = vmul.f32 0.6931472, %v1712_v38  ;;  %vm983_vm15 = vcmp.ge.f32.partialorder %v2507_v23, %v919_v4  ;;  %v1111_v11 = vmul.f32 %v2598_v37, %v1047_v15  ;;  %v925_v15 = vadd.f32 -13.815511, %v690_v59 }
 0x175   :  { %v3078_v17 = vpop.xlane.xlu1 %515  ;;  %v3080_v62 = vpop.xlane.xlu0 %572  ;;  %1265 = vadd.xlane.f32.xlu1 %v1264_v51 }
 0x176   :  { %1725 = vlog2.f32 %v3078_v17  ;;  %v920_v14 = vadd.f32 -13.815511, %v680_v12  ;;  %v1048_v31 = vsub.f32 %v2515_v9, %v680_v12  ;;  %v1175_v38 = vsel %vm983_vm15, %v1111_v11, 0.0  ;;  %v3844_v11 = vld [vmem:[#allocation27_spill] sm:$0xff] }
 0x177   :  { %v1714_v20 = vpop.eup %1713  ;;  %v1267_v23 = vsel %vm72_vm0, %v1175_v38, 0.0  ;;  %1727 = vlog2.f32 %v3030_v47  ;;  %vm989_vm3 = vcmp.ge.f32.partialorder %v3844_v11, %v925_v15 }
 0x178   :  { %v1716_v33 = vpop.eup %1715  ;;  %v682_v8 = vmul.f32 0.6931472, %v1714_v20  ;;  %vm984_vm1 = vcmp.ge.f32.partialorder %v2515_v9, %v920_v14  ;;  %v1112_v37 = vmul.f32 %v2605_v3, %v1048_v31  ;;  %v1053_v20 = vsub.f32 %v3844_v11, %v690_v59 }
 0x179   :  { %v3088_v53 = vpop.xlane.xlu1 %521  ;;  %v3090_v4 = vpop.xlane.xlu0 %578  ;;  %v694_v38 = vmul.f32 0.6931472, %v1716_v33  ;;  %1268 = vadd.xlane.f32.xlu1 %v1267_v23 }
 0x17a   :  { %3843 = vst [vmem:[#allocation86_spill] sm:$0xff] %v3088_v53  ;;  %1729 = vlog2.f32 %v3088_v53  ;;  %v921_v12 = vadd.f32 -13.815511, %v682_v8  ;;  %v1049_v51 = vsub.f32 %v2538_v16, %v682_v8  ;;  %v1176_v9 = vsel %vm984_vm1, %v1112_v37, 0.0 }
 0x17b   :  { %v1718_v5 = vpop.eup %1717  ;;  %1731 = vlog2.f32 %v3041_v22  ;;  %v1270_v54 = vsel %vm72_vm0, %v1176_v9, 0.0  ;;  %v1117_v23 = vmul.f32 %v2534_v7, %v1053_v20 }
 0x17c   :  { %v1720_v14 = vpop.eup %1719  ;;  %v684_v47 = vmul.f32 0.6931472, %v1718_v5  ;;  %vm985_vm2 = vcmp.ge.f32.partialorder %v2538_v16, %v921_v12  ;;  %v1113_v8 = vmul.f32 %v2631_v56, %v1049_v51  ;;  %v3847_v12 = vld [vmem:[#allocation28_spill] sm:$0xff]  ;;  %v927_v51 = vadd.f32 -13.815511, %v694_v38 }
 0x17d   :  { %v3099_v3 = vpop.xlane.xlu1 %527  ;;  %v3101_v31 = vpop.xlane.xlu0 %584  ;;  %v698_v37 = vmul.f32 0.6931472, %v1720_v14  ;;  %1271 = vadd.xlane.f32.xlu1 %v1270_v54  ;;  %v1055_v9 = vsub.f32 %v3847_v12, %v694_v38  ;;  %v1181_v54 = vsel %vm989_vm3, %v1117_v23, 0.0 }
 0x17e   :  { %3845 = vst [vmem:[#allocation27_spill] sm:$0xff] %v3099_v3  ;;  %3846 = vst [vmem:[#allocation87_spill] sm:$0xff] %v3101_v31  ;;  %1733 = vlog2.f32 %v3099_v3  ;;  %v922_v59 = vadd.f32 -13.815511, %v684_v47  ;;  %v1050_v33 = vsub.f32 %v2547_v25, %v684_v47  ;;  %v1177_v16 = vsel %vm985_vm2, %v1113_v8, 0.0 }
 0x17f   :  { %v1722_v5 = vpop.eup %1721  ;;  %1735 = vlog2.f32 %v3050_v43  ;;  %v1273_v56 = vsel %vm72_vm0, %v1177_v16, 0.0  ;;  %v3850_v16 = vld [vmem:[#allocation29_spill] sm:$0xff]  ;;  %vm991_vm6 = vcmp.ge.f32.partialorder %v3847_v12, %v927_v51 }
 0x180   :  { %v686_v22 = vmul.f32 0.6931472, %v1722_v5  ;;  %vm986_vm4 = vcmp.ge.f32.partialorder %v2547_v25, %v922_v59  ;;  %v1114_v47 = vmul.f32 %v2641_v60, %v1050_v33  ;;  %v1724_v53 = vpop.eup %1723  ;;  %v3849_v25 = vld [vmem:[#allocation33_spill] sm:$0xff]  ;;  %v929_v59 = vadd.f32 -13.815511, %v698_v37 }
 0x181   :  { %v3112_v3 = vpop.xlane.xlu1 %533  ;;  %1274 = vadd.xlane.f32.xlu1 %v1273_v56  ;;  %v3119_v8 = vpop.xlane.xlu0 %590  ;;  %v1119_v38 = vmul.f32 %v3849_v25, %v1055_v9  ;;  %v1057_v43 = vsub.f32 %v3850_v16, %v698_v37  ;;  %v1285_v56 = vsel %vm72_vm0, %v1181_v54, 0.0 }
 0x182   :  { %1737 = vlog2.f32 %v3112_v3  ;;  %v923_v7 = vadd.f32 -13.815511, %v686_v22  ;;  %v1051_v20 = vsub.f32 %v2574_v32, %v686_v22  ;;  %3848 = vst [vmem:[#allocation28_spill] sm:$0xff] %v3119_v8  ;;  %v1178_v5 = vsel %vm986_vm4, %v1114_v47, 0.0 }
 0x183   :  { %v1726_v14 = vpop.eup %1725  ;;  %v1276_v33 = vsel %vm72_vm0, %v1178_v5, 0.0  ;;  %v702_v22 = vmul.f32 0.6931472, %v1724_v53  ;;  %1739 = vlog2.f32 %v3060_v46  ;;  %vm993_vm7 = vcmp.ge.f32.partialorder %v3850_v16, %v929_v59  ;;  %v3851_v53 = vld [vmem:[#allocation35_spill] sm:$0xff] }
 0x184   :  { %v688_v60 = vmul.f32 0.6931472, %v1726_v14  ;;  %vm987_vm5 = vcmp.ge.f32.partialorder %v2574_v32, %v923_v7  ;;  %v1115_v11 = vmul.f32 %v2668_v0, %v1051_v20  ;;  %v1728_v23 = vpop.eup %1727  ;;  %v1183_v7 = vsel %vm991_vm6, %v1119_v38, 0.0  ;;  %v3852_v38 = vld [vmem:[#allocation30_spill] sm:$0xff]  ;;  %v3854_v16 = vld [vmem:[#allocation31_spill] sm:$0xff] }
 0x185   :  { %v3127_v15 = vpop.xlane.xlu1 %539  ;;  %1277 = vadd.xlane.f32.xlu1 %v1276_v33  ;;  %v1121_v12 = vmul.f32 %v3851_v53, %v1057_v43  ;;  %v706_v14 = vmul.f32 0.6931472, %v1728_v23  ;;  %v3139_v54 = vpop.xlane.xlu0 %596  ;;  %v1059_v43 = vsub.f32 %v3852_v38, %v702_v22 }
 0x186   :  { %1741 = vlog2.f32 %v3127_v15  ;;  %v924_v9 = vadd.f32 -13.815511, %v688_v60  ;;  %v1052_v37 = vsub.f32 %v2583_v55, %v688_v60  ;;  %v1179_v32 = vsel %vm987_vm5, %v1115_v11, 0.0 }
 0x187   :  { %v1730_v47 = vpop.eup %1729  ;;  %1743 = vlog2.f32 %v3070_v1  ;;  %v1279_v20 = vsel %vm72_vm0, %v1179_v32, 0.0  ;;  %v931_v11 = vadd.f32 -13.815511, %v702_v22  ;;  %v933_v59 = vadd.f32 -13.815511, %v706_v14 }
 0x188   :  { %v1732_v51 = vpop.eup %1731  ;;  %v692_v0 = vmul.f32 0.6931472, %v1730_v47  ;;  %vm988_vm8 = vcmp.ge.f32.partialorder %v2583_v55, %v924_v9  ;;  %1745 = vlog2.f32 %v3080_v62  ;;  %1280 = vadd.xlane.f32.xlu0 %v1279_v20  ;;  %v1116_v25 = vmul.f32 %v2675_v18, %v1052_v37 }
 0x189   :  { %v3141_v5 = vpop.xlane.xlu1 %545  ;;  %v3147_v55 = vmul.f32 0.6931472, %v1732_v51  ;;  %v1185_v9 = vsel %vm993_vm7, %v1121_v12, 0.0  ;;  %v1061_v12 = vsub.f32 %v3854_v16, %v706_v14  ;;  %vm995_vm10 = vcmp.ge.f32.partialorder %v3852_v38, %v931_v11 }
 0x18a   :  { %1747 = vlog2.f32 %v3141_v5  ;;  %v926_v60 = vadd.f32 -13.815511, %v692_v0  ;;  %v1054_v33 = vsub.f32 %v2603_v39, %v692_v0  ;;  %v1180_v23 = vsel %vm988_vm8, %v1116_v25, 0.0  ;;  %v3853_v0 = vld [vmem:[#allocation37_spill] sm:$0xff] }
 0x18b   :  { %v1734_v47 = vpop.eup %1733  ;;  %1749 = vlog2.f32 %v3090_v4  ;;  %v1282_v18 = vsel %vm72_vm0, %v1180_v23, 0.0  ;;  %v1123_v20 = vmul.f32 %v3853_v0, %v1059_v43  ;;  %v1291_v23 = vsel %vm72_vm0, %v1183_v7, 0.0 }
 0x18c   :  { %v1736_v32 = vpop.eup %1735  ;;  %v696_v53 = vmul.f32 0.6931472, %v1734_v47  ;;  %vm990_vm9 = vcmp.ge.f32.partialorder %v2603_v39, %v926_v60  ;;  %v1118_v37 = vmul.f32 %v2688_v40, %v1054_v33  ;;  %1751 = vlog2.f32 %v3101_v31  ;;  %1283 = vadd.xlane.f32.xlu1 %v1282_v18  ;;  %1286 = vadd.xlane.f32.xlu0 %v1285_v56 }
 0x18d   :  { %v3156_v22 = vpop.xlane.xlu1 %551  ;;  %v3158_v51 = vpop.xlane.xlu0 %602  ;;  %v714_v40 = vmul.f32 0.6931472, %v1736_v32  ;;  %v1297_v43 = vsel %vm72_vm0, %v1185_v9, 0.0  ;;  %v1187_v11 = vsel %vm995_vm10, %v1123_v20, 0.0  ;;  %vm997_vm12 = vcmp.ge.f32.partialorder %v3854_v16, %v933_v59  ;;  %v3856_v9 = vld [vmem:[#allocation32_spill] sm:$0xff] }
 0x18e   :  { %1753 = vlog2.f32 %v3156_v22  ;;  %v1182_v25 = vsel %vm990_vm9, %v1118_v37, 0.0  ;;  %v928_v47 = vadd.f32 -13.815511, %v696_v53  ;;  %v1056_v56 = vsub.f32 %v2622_v24, %v696_v53 }
 0x18f   :  { %v1738_v39 = vpop.eup %1737  ;;  %v1288_v60 = vsel %vm72_vm0, %v1182_v25, 0.0  ;;  %v1125_v32 = vmul.f32 %v2610_v36, %v1061_v12  ;;  %v1063_v0 = vsub.f32 %v3856_v9, %v3147_v55  ;;  %v935_v20 = vadd.f32 -13.815511, %v3147_v55 }
 0x190   :  { %v700_v33 = vmul.f32 0.6931472, %v1738_v39  ;;  %vm992_vm11 = vcmp.ge.f32.partialorder %v2622_v24, %v928_v47  ;;  %1289 = vadd.xlane.f32.xlu1 %v1288_v60  ;;  %1292 = vadd.xlane.f32.xlu0 %v1291_v23  ;;  %v1120_v38 = vmul.f32 %v2709_v57, %v1056_v56  ;;  %v1740_v53 = vpop.eup %1739  ;;  %v3857_v39 = vld [vmem:[#allocation34_spill] sm:$0xff]  ;;  %v937_v56 = vadd.f32 -13.815511, %v714_v40 }
 0x191   :  { %v3169_v14 = vpop.xlane.xlu1 %557  ;;  %v3171_v18 = vpop.xlane.xlu0 %605  ;;  %v1065_v60 = vsub.f32 %v3857_v39, %v714_v40  ;;  %v718_v23 = vmul.f32 0.6931472, %v1740_v53  ;;  %v1189_v55 = vsel %vm997_vm12, %v1125_v32, 0.0  ;;  %v1127_v40 = vmul.f32 %v2629_v10, %v1063_v0 }
 0x192   :  { %3855 = vst [vmem:[#allocation33_spill] sm:$0xff] %v3171_v18  ;;  %1755 = vlog2.f32 %v3169_v14  ;;  %v930_v7 = vadd.f32 -13.815511, %v700_v33  ;;  %v1058_v37 = vsub.f32 %v2639_v26, %v700_v33  ;;  %v1184_v57 = vsel %vm992_vm11, %v1120_v38, 0.0 }
 0x193   :  { %v1742_v25 = vpop.eup %1741  ;;  %1757 = vlog2.f32 %v3119_v8  ;;  %v1294_v12 = vsel %vm72_vm0, %v1184_v57, 0.0  ;;  %v1303_v57 = vsel %vm72_vm0, %v1187_v11, 0.0  ;;  %vm999_vm14 = vcmp.ge.f32.partialorder %v3856_v9, %v935_v20 }
 0x194   :  { %v704_v36 = vmul.f32 0.6931472, %v1742_v25  ;;  %vm994_vm13 = vcmp.ge.f32.partialorder %v2639_v26, %v930_v7  ;;  %v1744_v33 = vpop.eup %1743  ;;  %1295 = vadd.xlane.f32.xlu1 %v1294_v12  ;;  %1298 = vadd.xlane.f32.xlu0 %v1297_v43  ;;  %v1122_v24 = vmul.f32 %v2722_v52, %v1058_v37  ;;  %v3859_v52 = vld [vmem:[#allocation41_spill] sm:$0xff]  ;;  %vm1001_vm1 = vcmp.ge.f32.partialorder %v3857_v39, %v937_v56 }
 0x195   :  { %v3187_v31 = vpop.xlane.xlu1 %563  ;;  %v3189_v8 = vpop.xlane.xlu0 %608  ;;  %v1129_v37 = vmul.f32 %v3859_v52, %v1065_v60  ;;  %v1309_v0 = vsel %vm72_vm0, %v1189_v55, 0.0  ;;  %v939_v52 = vadd.f32 -13.815511, %v718_v23 }
 0x196   :  { %3858 = vst [vmem:[#allocation29_spill] sm:$0xff] %v3189_v8  ;;  %v1746_v47 = vpop.eup %1745  ;;  %1759 = vlog2.f32 %v3187_v31  ;;  %v932_v38 = vadd.f32 -13.815511, %v704_v36  ;;  %v1060_v25 = vsub.f32 %v2656_v34, %v704_v36  ;;  %v1186_v43 = vsel %vm994_vm13, %v1122_v24, 0.0 }
 0x197   :  { %v1748_v53 = vpop.eup %1747  ;;  %v1300_v32 = vsel %vm72_vm0, %v1186_v43, 0.0  ;;  %v722_v36 = vmul.f32 0.6931472, %v1744_v33  ;;  %v3205_v10 = vmul.f32 0.6931472, %v1746_v47  ;;  %v1191_v33 = vsel %vm999_vm14, %v1127_v40, 0.0 }
 0x198   :  { %v1750_v59 = vpop.eup %1749  ;;  %v708_v16 = vmul.f32 0.6931472, %v1748_v53  ;;  %vm996_vm15 = vcmp.ge.f32.partialorder %v2656_v34, %v932_v38  ;;  %1301 = vadd.xlane.f32.xlu1 %v1300_v32  ;;  %1304 = vadd.xlane.f32.xlu0 %v1303_v57  ;;  %v1124_v7 = vmul.f32 %v2738_v6, %v1060_v25  ;;  %v1193_v6 = vsel %vm1001_vm1, %v1129_v37, 0.0  ;;  %v3861_v25 = vld [vmem:[#allocation36_spill] sm:$0xff] }
 0x199   :  { %v3207_v26 = vpop.xlane.xlu1 %569  ;;  %v3209_v11 = vpop.xlane.xlu0 %611  ;;  %v1067_v55 = vsub.f32 %v3861_v25, %v718_v23  ;;  %v1315_v20 = vsel %vm72_vm0, %v1191_v33, 0.0  ;;  %v941_v39 = vadd.f32 -13.815511, %v722_v36  ;;  %v1321_v32 = vsel %vm72_vm0, %v1193_v6, 0.0 }
 0x19a   :  { %3860 = vst [vmem:[#allocation35_spill] sm:$0xff] %v3209_v11  ;;  %v1752_v60 = vpop.eup %1751  ;;  %1761 = vlog2.f32 %v3207_v26  ;;  %v934_v12 = vadd.f32 -13.815511, %v708_v16  ;;  %v1062_v24 = vsub.f32 %v2673_v13, %v708_v16  ;;  %v1188_v53 = vsel %vm996_vm15, %v1124_v7, 0.0  ;;  %v3864_v7 = vld [vmem:[#allocation43_spill] sm:$0xff] }
 0x19b   :  { %v1754_v47 = vpop.eup %1753  ;;  %1763 = vlog2.f32 %v3139_v54  ;;  %v1306_v57 = vsel %vm72_vm0, %v1188_v53, 0.0  ;;  %v3225_v16 = vmul.f32 0.6931472, %v1750_v59  ;;  %v3231_v56 = vmul.f32 0.6931472, %v1752_v60 }
 0x19c   :  { %v712_v43 = vmul.f32 0.6931472, %v1754_v47  ;;  %vm998_vm2 = vcmp.ge.f32.partialorder %v2673_v13, %v934_v12  ;;  %1307 = vadd.xlane.f32.xlu1 %v1306_v57  ;;  %1310 = vadd.xlane.f32.xlu0 %v1309_v0  ;;  %v1126_v34 = vmul.f32 %v2754_v48, %v1062_v24  ;;  %v3863_v13 = vld [vmem:[#allocation47_spill] sm:$0xff]  ;;  %v1131_v0 = vmul.f32 %v3864_v7, %v1067_v55  ;;  %v3865_v12 = vld [vmem:[#allocation38_spill] sm:$0xff]  ;;  %v3869_v7 = vld [vmem:[#allocation48_spill] sm:$0xff] }
 0x19d   :  { %v3227_v9 = vpop.xlane.xlu1 %575  ;;  %v3234_v38 = vpop.xlane.xlu0 %614  ;;  %v1069_v48 = vsub.f32 %v3865_v12, %v722_v36  ;;  %vm1003_vm4 = vcmp.ge.f32.partialorder %v3861_v25, %v939_v52  ;;  %vm1005_vm5 = vcmp.ge.f32.partialorder %v3865_v12, %v941_v39  ;;  %v3866_v36 = vld [vmem:[#allocation39_spill] sm:$0xff]  ;;  %v943_v25 = vadd.f32 -13.815511, %v3205_v10 }
 0x19e   :  { %1765 = vlog2.f32 %v3227_v9  ;;  %3862 = vst [vmem:[#allocation30_spill] sm:$0xff] %v3234_v38  ;;  %v936_v40 = vadd.f32 -13.815511, %v712_v43  ;;  %v1064_v23 = vsub.f32 %v3863_v13, %v712_v43  ;;  %v1190_v59 = vsel %vm998_vm2, %v1126_v34, 0.0 }
 0x19f   :  { %v1756_v37 = vpop.eup %1755  ;;  %v1312_v60 = vsel %vm72_vm0, %v1190_v59, 0.0  ;;  %1767 = vlog2.f32 %v3158_v51  ;;  %v1071_v6 = vsub.f32 %v3866_v36, %v3205_v10  ;;  %vm1007_vm7 = vcmp.ge.f32.partialorder %v3866_v36, %v943_v25  ;;  %v3871_v25 = vld [vmem:[#allocation64_spill] sm:$0xff] }
 0x1a0   :  { %v1758_v24 = vpop.eup %1757  ;;  %v716_v33 = vmul.f32 0.6931472, %v1756_v37  ;;  %vm1000_vm3 = vcmp.ge.f32.partialorder %v3863_v13, %v936_v40  ;;  %1313 = vadd.xlane.f32.xlu1 %v1312_v60  ;;  %1316 = vadd.xlane.f32.xlu0 %v1315_v20  ;;  %v1128_v53 = vmul.f32 %v2775_v29, %v1064_v23  ;;  %v1195_v20 = vsel %vm1003_vm4, %v1131_v0, 0.0  ;;  %v3867_v40 = vld [vmem:[#allocation45_spill] sm:$0xff] }
 0x1a1   :  { %v3244_v47 = vpop.xlane.xlu1 %581  ;;  %v3253_v52 = vmul.f32 0.6931472, %v1758_v24  ;;  %v1133_v13 = vmul.f32 %v3867_v40, %v1069_v48  ;;  %v3257_v23 = vpop.xlane.xlu0 %617  ;;  %v1135_v24 = vmul.f32 %v3869_v7, %v1071_v6  ;;  %v945_v0 = vadd.f32 -13.815511, %v3225_v16  ;;  %v3870_v48 = vld [vmem:[#allocation40_spill] sm:$0xff] }
 0x1a2   :  { %1769 = vlog2.f32 %v3244_v47  ;;  %v938_v55 = vadd.f32 -13.815511, %v716_v33  ;;  %v1066_v43 = vsub.f32 %v2707_v28, %v716_v33  ;;  %v1192_v34 = vsel %vm1000_vm3, %v1128_v53, 0.0  ;;  %3868 = vst [vmem:[#allocation37_spill] sm:$0xff] %v3257_v23 }
 0x1a3   :  { %v1760_v57 = vpop.eup %1759  ;;  %1771 = vlog2.f32 %v3171_v18  ;;  %v1318_v37 = vsel %vm72_vm0, %v1192_v34, 0.0  ;;  %v1073_v33 = vsub.f32 %v3870_v48, %v3225_v16  ;;  %v1197_v6 = vsel %vm1005_vm5, %v1133_v13, 0.0  ;;  %v3874_v13 = vld [vmem:[#allocation52_spill] sm:$0xff]  ;;  %v3895_v18 = vld [vmem:[#allocation2_spill] sm:$0xff] }
 0x1a4   :  { %v720_v29 = vmul.f32 0.6931472, %v1760_v57  ;;  %vm1002_vm6 = vcmp.ge.f32.partialorder %v2707_v28, %v938_v55  ;;  %1319 = vadd.xlane.f32.xlu1 %v1318_v37  ;;  %1322 = vadd.xlane.f32.xlu0 %v1321_v32  ;;  %v1130_v10 = vmul.f32 %v2782_v35, %v1066_v43  ;;  %v1327_v35 = vsel %vm72_vm0, %v1195_v20, 0.0  ;;  %v3872_v20 = vld [vmem:[#allocation49_spill] sm:$0xff] }
 0x1a5   :  { %v3261_v59 = vpop.xlane.xlu1 %587  ;;  %v1199_v34 = vsel %vm1007_vm7, %v1135_v24, 0.0  ;;  %vm1009_vm9 = vcmp.ge.f32.partialorder %v3870_v48, %v945_v0  ;;  %v1137_v39 = vmul.f32 %v3872_v20, %v1073_v33  ;;  %v3283_v12 = vpop.xlane.xlu0 %620  ;;  %v1333_v24 = vsel %vm72_vm0, %v1197_v6, 0.0  ;;  %v3878_v20 = vld [vmem:[#allocation51_spill] sm:$0xff] }
 0x1a6   :  { %1773 = vlog2.f32 %v3261_v59  ;;  %v940_v60 = vadd.f32 -13.815511, %v720_v29  ;;  %v1068_v53 = vsub.f32 %v2720_v41, %v720_v29  ;;  %v1194_v32 = vsel %vm1002_vm6, %v1130_v10, 0.0  ;;  %3873 = vst [vmem:[#allocation31_spill] sm:$0xff] %v3283_v12 }
 0x1a7   :  { %v1762_v28 = vpop.eup %1761  ;;  %1775 = vlog2.f32 %v3189_v8  ;;  %v1324_v16 = vsel %vm72_vm0, %v1194_v32, 0.0 }
 0x1a8   :  { %v1764_v55 = vpop.eup %1763  ;;  %v724_v43 = vmul.f32 0.6931472, %v1762_v28  ;;  %1777 = vlog2.f32 %v3209_v11  ;;  %vm1004_vm8 = vcmp.ge.f32.partialorder %v2720_v41, %v940_v60  ;;  %1325 = vadd.xlane.f32.xlu1 %v1324_v16  ;;  %1328 = vadd.xlane.f32.xlu0 %v1327_v35  ;;  %v1132_v57 = vmul.f32 %v3871_v25, %v1068_v53  ;;  %v3875_v41 = vld [vmem:[#allocation42_spill] sm:$0xff]  ;;  %v3876_v35 = vld [vmem:[#allocation67_spill] sm:$0xff] }
 0x1a9   :  { %v3278_v36 = vpop.xlane.xlu1 %593  ;;  %v1075_v37 = vsub.f32 %v3875_v41, %v3231_v56  ;;  %v3289_v7 = vmul.f32 0.6931472, %v1764_v55  ;;  %v947_v53 = vadd.f32 -13.815511, %v3231_v56  ;;  %v1201_v56 = vsel %vm1009_vm9, %v1137_v39, 0.0  ;;  %v3877_v25 = vld [vmem:[#allocation55_spill] sm:$0xff]  ;;  %v3310_v0 = vpop.xlane.xlu0 %623 }
 0x1aa   :  { %1779 = vlog2.f32 %v3278_v36  ;;  %v942_v40 = vadd.f32 -13.815511, %v724_v43  ;;  %v1070_v29 = vsub.f32 %v3874_v13, %v724_v43  ;;  %v1196_v60 = vsel %vm1004_vm8, %v1132_v57, 0.0  ;;  %3880 = vst [vmem:[#allocation32_spill] sm:$0xff] %v3310_v0  ;;  %v3881_v39 = vld [vmem:[#allocation69_spill] sm:$0xff] }
 0x1ab   :  { %v1766_v10 = vpop.eup %1765  ;;  %1781 = vlog2.f32 %v3234_v38  ;;  %v1330_v33 = vsel %vm72_vm0, %v1196_v60, 0.0  ;;  %v1339_v43 = vsel %vm72_vm0, %v1199_v34, 0.0  ;;  %vm1011_vm11 = vcmp.ge.f32.partialorder %v3875_v41, %v947_v53 }
 0x1ac   :  { %v728_v28 = vmul.f32 0.6931472, %v1766_v10  ;;  %vm1006_vm10 = vcmp.ge.f32.partialorder %v3874_v13, %v942_v40  ;;  %1783 = vlog2.f32 %v3257_v23  ;;  %1331 = vadd.xlane.f32.xlu1 %v1330_v33  ;;  %1334 = vadd.xlane.f32.xlu0 %v1333_v24  ;;  %v1134_v55 = vmul.f32 %v3876_v35, %v1070_v29  ;;  %v1768_v6 = vpop.eup %1767  ;;  %v3879_v29 = vld [vmem:[#allocation44_spill] sm:$0xff] }
 0x1ad   :  { %v3297_v32 = vpop.xlane.xlu1 %599  ;;  %v1139_v40 = vmul.f32 %v3878_v20, %v1075_v37  ;;  %v949_v60 = vadd.f32 -13.815511, %v3253_v52  ;;  %v1077_v34 = vsub.f32 %v3879_v29, %v3253_v52  ;;  %v746_v37 = vmul.f32 0.6931472, %v1768_v6  ;;  %v3882_v52 = vld [vmem:[#allocation58_spill] sm:$0xff] }
 0x1ae   :  { %1785 = vlog2.f32 %v3297_v32  ;;  %v944_v16 = vadd.f32 -13.815511, %v728_v28  ;;  %v1072_v57 = vsub.f32 %v3877_v25, %v728_v28  ;;  %v1198_v10 = vsel %vm1006_vm10, %v1134_v55, 0.0  ;;  %v3883_v6 = vld [vmem:[#allocation54_spill] sm:$0xff] }
 0x1af   :  { %v1770_v13 = vpop.eup %1769  ;;  %v1336_v48 = vsel %vm72_vm0, %v1198_v10, 0.0  ;;  %1787 = vlog2.f32 %v3283_v12  ;;  %v1345_v35 = vsel %vm72_vm0, %v1201_v56, 0.0  ;;  %v1203_v23 = vsel %vm1011_vm11, %v1139_v40, 0.0  ;;  %v3884_v56 = vld [vmem:[#allocation71_spill] sm:$0xff] }
 0x1b0   :  { %v732_v24 = vmul.f32 0.6931472, %v1770_v13  ;;  %vm1008_vm12 = vcmp.ge.f32.partialorder %v3877_v25, %v944_v16  ;;  %v1136_v28 = vmul.f32 %v3881_v39, %v1072_v57  ;;  %v1772_v33 = vpop.eup %1771  ;;  %1337 = vadd.xlane.f32.xlu1 %v1336_v48  ;;  %1340 = vadd.xlane.f32.xlu0 %v1339_v43  ;;  %1789 = vlog2.f32 %v3310_v0 }
 0x1b1   :  { %vm1013_vm13 = vcmp.ge.f32.partialorder %v3879_v29, %v949_v60  ;;  %v1141_v25 = vmul.f32 %v3883_v6, %v1077_v34  ;;  %v748_v53 = vmul.f32 0.6931472, %v1772_v33  ;;  %v951_v40 = vadd.f32 -13.815511, %v3289_v7  ;;  %v3886_v34 = vld [vmem:[#allocation60_spill] sm:$0xff] }
 0x1b2   :  { %v1200_v55 = vsel %vm1008_vm12, %v1136_v28, 0.0  ;;  %v946_v20 = vadd.f32 -13.815511, %v732_v24  ;;  %v1074_v13 = vsub.f32 %v3882_v52, %v732_v24  ;;  %v3885_v24 = vld [vmem:[#allocation46_spill] sm:$0xff] }
 0x1b3   :  { %v1774_v10 = vpop.eup %1773  ;;  %v1342_v16 = vsel %vm72_vm0, %v1200_v55, 0.0  ;;  %v1079_v39 = vsub.f32 %v3885_v24, %v3289_v7  ;;  %v1351_v55 = vsel %vm72_vm0, %v1203_v23, 0.0  ;;  %vm1015_vm1 = vcmp.ge.f32.partialorder %v3885_v24, %v951_v40  ;;  %v3893_v24 = vld [vmem:[#allocation75_spill] sm:$0xff] }
 0x1b4   :  { %v1776_v57 = vpop.eup %1775  ;;  %v736_v43 = vmul.f32 0.6931472, %v1774_v10  ;;  %vm1010_vm14 = vcmp.ge.f32.partialorder %v3882_v52, %v946_v20  ;;  %v1138_v48 = vmul.f32 %v3884_v56, %v1074_v13  ;;  %1343 = vadd.xlane.f32.xlu1 %v1342_v16  ;;  %1346 = vadd.xlane.f32.xlu0 %v1345_v35  ;;  %v1205_v52 = vsel %vm1013_vm13, %v1141_v25, 0.0  ;;  %v3887_v56 = vld [vmem:[#allocation50_spill] sm:$0xff]  ;;  %v3888_v35 = vld [vmem:[#allocation73_spill] sm:$0xff] }
 0x1b5   :  { %v1778_v41 = vpop.eup %1777  ;;  %v953_v13 = vadd.f32 -13.815511, %v746_v37  ;;  %v1081_v12 = vsub.f32 %v3887_v56, %v746_v37  ;;  %v3889_v16 = vld [vmem:[#allocation57_spill] sm:$0xff]  ;;  %v750_v38 = vmul.f32 0.6931472, %v1776_v57  ;;  %v1357_v29 = vsel %vm72_vm0, %v1205_v52, 0.0 }
 0x1b6   :  { %v1202_v28 = vsel %vm1010_vm14, %v1138_v48, 0.0  ;;  %v948_v0 = vadd.f32 -13.815511, %v736_v43  ;;  %v1076_v6 = vsub.f32 %v3886_v34, %v736_v43  ;;  %v1143_v48 = vmul.f32 %v3889_v16, %v1079_v39  ;;  %v3890_v37 = vld [vmem:[#allocation63_spill] sm:$0xff]  ;;  %v3891_v39 = vld [vmem:[#allocation62_spill] sm:$0xff]  ;;  %v3892_v57 = vld [vmem:[#allocation53_spill] sm:$0xff] }
 0x1b7   :  { %v1780_v10 = vpop.eup %1779  ;;  %v1348_v20 = vsel %vm72_vm0, %v1202_v28, 0.0  ;;  %v752_v11 = vmul.f32 0.6931472, %v1778_v41  ;;  %vm1017_vm2 = vcmp.ge.f32.partialorder %v3887_v56, %v953_v13  ;;  %v1082_v41 = vsub.f32 %v3892_v57, %v748_v53 }
 0x1b8   :  { %v740_v33 = vmul.f32 0.6931472, %v1780_v10  ;;  %vm1012_vm15 = vcmp.ge.f32.partialorder %v3886_v34, %v948_v0  ;;  %v1140_v7 = vmul.f32 %v3888_v35, %v1076_v6  ;;  %v1782_v23 = vpop.eup %1781  ;;  %1349 = vadd.xlane.f32.xlu1 %v1348_v20  ;;  %1352 = vadd.xlane.f32.xlu0 %v1351_v55  ;;  %v1145_v34 = vmul.f32 %v3891_v39, %v1081_v12  ;;  %v3894_v35 = vld [vmem:[#allocation56_spill] sm:$0xff] }
 0x1b9   :  { %v1784_v43 = vpop.eup %1783  ;;  %v1207_v55 = vsel %vm1015_vm1, %v1143_v48, 0.0  ;;  %v754_v20 = vmul.f32 0.6931472, %v1782_v23  ;;  %v955_v39 = vadd.f32 -13.815511, %v750_v38  ;;  %v3896_v23 = vld [vmem:[#allocation66_spill] sm:$0xff] }
 0x1ba   :  { %v1204_v60 = vsel %vm1012_vm15, %v1140_v7, 0.0  ;;  %v950_v25 = vadd.f32 -13.815511, %v740_v33  ;;  %v1078_v28 = vsub.f32 %v3890_v37, %v740_v33  ;;  %v756_v52 = vmul.f32 0.6931472, %v1784_v43 }
 0x1bb   :  { %v1786_v10 = vpop.eup %1785  ;;  %v1354_v0 = vsel %vm72_vm0, %v1204_v60, 0.0  ;;  %v954_v33 = vadd.f32 -13.815511, %v748_v53  ;;  %v1083_v7 = vsub.f32 %v3894_v35, %v750_v38  ;;  %v1209_v48 = vsel %vm1017_vm2, %v1145_v34, 0.0  ;;  %v3897_v53 = vld [vmem:[#allocation78_spill] sm:$0xff]  ;;  %v3899_v38 = vld [vmem:[#allocation68_spill] sm:$0xff] }
 0x1bc   :  { %v744_v6 = vmul.f32 0.6931472, %v1786_v10  ;;  %vm1014_vm3 = vcmp.ge.f32.partialorder %v3890_v37, %v950_v25  ;;  %v1142_v40 = vmul.f32 %v3893_v24, %v1078_v28  ;;  %1355 = vadd.xlane.f32.xlu1 %v1354_v0  ;;  %1358 = vadd.xlane.f32.xlu0 %v1357_v29  ;;  %v1788_v16 = vpop.eup %1787  ;;  %v1363_v25 = vsel %vm72_vm0, %v1207_v55, 0.0  ;;  %v3898_v0 = vld [vmem:[#allocation59_spill] sm:$0xff]  ;;  %v3900_v55 = vld [vmem:[#allocation61_spill] sm:$0xff] }
 0x1bd   :  { %v1146_v43 = vmul.f32 %v3896_v23, %v1082_v41  ;;  %v1790_v37 = vpop.eup %1789  ;;  %v956_v28 = vadd.f32 -13.815511, %v752_v11  ;;  %v1084_v24 = vsub.f32 %v3898_v0, %v752_v11  ;;  %vm1018_vm5 = vcmp.ge.f32.partialorder %v3892_v57, %v954_v33  ;;  %v3901_v11 = vld [vmem:[#allocation70_spill] sm:$0xff]  ;;  %v3902_v33 = vld [vmem:[#allocation72_spill] sm:$0xff] }
 0x1be   :  { %v1206_v60 = vsel %vm1014_vm3, %v1142_v40, 0.0  ;;  %v952_v8 = vadd.f32 -13.815511, %v744_v6  ;;  %v1080_v12 = vsub.f32 %v3895_v18, %v744_v6  ;;  %v758_v40 = vmul.f32 0.6931472, %v1788_v16 }
 0x1bf   :  { %v1360_v10 = vsel %vm72_vm0, %v1206_v60, 0.0  ;;  %v1147_v6 = vmul.f32 %v3899_v38, %v1083_v7  ;;  %v1085_v13 = vsub.f32 %v3900_v55, %v754_v20  ;;  %vm1019_vm6 = vcmp.ge.f32.partialorder %v3894_v35, %v955_v39 }
 0x1c0   :  { %vm1016_vm4 = vcmp.ge.f32.partialorder %v3895_v18, %v952_v8  ;;  %v1144_v29 = vmul.f32 %v3897_v53, %v1080_v12  ;;  %1361 = vadd.xlane.f32.xlu1 %v1360_v10  ;;  %1364 = vadd.xlane.f32.xlu0 %v1363_v25  ;;  %v957_v34 = vadd.f32 -13.815511, %v754_v20  ;;  %v1369_v18 = vsel %vm72_vm0, %v1209_v48, 0.0  ;;  %v3903_v12 = vld [vmem:[#allocation65_spill] sm:$0xff]  ;;  %v3904_v25 = vld [vmem:[#allocation3_spill] sm:$0xff]  ;;  %v3905_v53 = vld [vmem:[#allocation74_spill] sm:$0xff] }
 0x1c1   :  { %v760_v41 = vmul.f32 0.6931472, %v1790_v37  ;;  %v1210_v60 = vsel %vm1018_vm5, %v1146_v43, 0.0  ;;  %vm1020_vm7 = vcmp.ge.f32.partialorder %v3898_v0, %v956_v28  ;;  %v1148_v16 = vmul.f32 %v3901_v11, %v1084_v24  ;;  %v3906_v28 = vld [vmem:[#allocation76_spill] sm:$0xff] }
 0x1c2   :  { %v1208_v56 = vsel %vm1016_vm4, %v1144_v29, 0.0  ;;  %v1211_v57 = vsel %vm1019_vm6, %v1147_v6, 0.0  ;;  %v1149_v7 = vmul.f32 %v3902_v33, %v1085_v13  ;;  %v1086_v10 = vsub.f32 %v3903_v12, %v756_v52  ;;  %v3907_v24 = vld [vmem:[#allocation4_spill] sm:$0xff] }
 0x1c3   :  { %v1366_v8 = vsel %vm72_vm0, %v1208_v56, 0.0  ;;  %v1087_v35 = vsub.f32 %v3904_v25, %v758_v40  ;;  %vm1021_vm8 = vcmp.ge.f32.partialorder %v3900_v55, %v957_v34  ;;  %v958_v20 = vadd.f32 -13.815511, %v756_v52  ;;  %v3908_v34 = vld [vmem:[#allocation77_spill] sm:$0xff] }
 0x1c4   :  { %1367 = vadd.xlane.f32.xlu1 %v1366_v8  ;;  %1370 = vadd.xlane.f32.xlu0 %v1369_v18  ;;  %v959_v39 = vadd.f32 -13.815511, %v758_v40  ;;  %v1372_v48 = vsel %vm72_vm0, %v1210_v60, 0.0  ;;  %v1375_v23 = vsel %vm72_vm0, %v1211_v57, 0.0  ;;  %v1212_v43 = vsel %vm1020_vm7, %v1148_v16, 0.0 }
 0x1c5   :  { %v1213_v37 = vsel %vm1021_vm8, %v1149_v7, 0.0  ;;  %v1150_v29 = vmul.f32 %v3905_v53, %v1086_v10  ;;  %v1151_v0 = vmul.f32 %v3906_v28, %v1087_v35  ;;  %v1088_v38 = vsub.f32 %v3907_v24, %v760_v41  ;;  %v3910_v53 = vld [vmem:[#allocation5_spill] sm:$0xff] }
 0x1c6   :  { %vm1022_vm9 = vcmp.ge.f32.partialorder %v3903_v12, %v958_v20  ;;  %vm1023_vm10 = vcmp.ge.f32.partialorder %v3904_v25, %v959_v39  ;;  %v960_v52 = vadd.f32 -13.815511, %v760_v41  ;;  %v1378_v40 = vsel %vm72_vm0, %v1212_v43, 0.0 }
 0x1c7   :  { %v1381_v6 = vsel %vm72_vm0, %v1213_v37, 0.0  ;;  %v1214_v13 = vsel %vm1022_vm9, %v1150_v29, 0.0  ;;  %v1215_v56 = vsel %vm1023_vm10, %v1151_v0, 0.0  ;;  %v1152_v8 = vmul.f32 %v3908_v34, %v1088_v38  ;;  %v3911_v0 = vld [vmem:[#allocation80_spill] sm:$0xff]  ;;  %v3913_v34 = vld [vmem:[#allocation6_spill] sm:$0xff] }
 0x1c8   :  { %1373 = vadd.xlane.f32.xlu1 %v1372_v48  ;;  %1376 = vadd.xlane.f32.xlu0 %v1375_v23  ;;  %vm1024_vm11 = vcmp.ge.f32.partialorder %v3907_v24, %v960_v52  ;;  %v1384_v60 = vsel %vm72_vm0, %v1214_v13, 0.0  ;;  %v1387_v41 = vsel %vm72_vm0, %v1215_v56, 0.0  ;;  %v3909_v23 = vld [vmem:[#allocation79_spill] sm:$0xff] }
 0x1c9   :  { %v1216_v16 = vsel %vm1024_vm11, %v1152_v8, 0.0 }
 0x1ca   :  { %v1390_v33 = vsel %vm72_vm0, %v1216_v16, 0.0 }
 0x1cc   :  { %1379 = vadd.xlane.f32.xlu1 %v1378_v40  ;;  %1382 = vadd.xlane.f32.xlu0 %v1381_v6  ;;  %v3378_v55 = vpop.xlane.xlu0 %1226  ;;  %v3912_v40 = vld [vmem:[#allocation81_spill] sm:$0xff] }
 0x1ce   :  { %v3382_v18 = vpop.xlane.xlu1 %1229 }
 0x1d0   :  { %1385 = vadd.xlane.f32.xlu1 %v1384_v60  ;;  %1388 = vadd.xlane.f32.xlu0 %v1387_v41  ;;  %v3386_v11 = vpop.xlane.xlu0 %626  ;;  %v3914_v41 = vld [vmem:[#allocation82_spill] sm:$0xff] }
 0x1d1   :  { %1791 = vlog2.f32 %v3386_v11 }
 0x1d2   :  { %v3389_v57 = vpop.xlane.xlu1 %1232 }
 0x1d4   :  { %1391 = vadd.xlane.f32.xlu1 %v1390_v33  ;;  %v3392_v7 = vpop.xlane.xlu0 %629 }
 0x1d5   :  { %1793 = vlog2.f32 %v3392_v7 }
 0x1d6   :  { %v3395_v12 = vpop.xlane.xlu1 %1235 }
 0x1d8   :  { %v3397_v10 = vpop.xlane.xlu0 %632 }
 0x1d9   :  { %1795 = vlog2.f32 %v3397_v10 }
 0x1da   :  { %v3400_v25 = vpop.xlane.xlu1 %1238 }
 0x1dc   :  { %v3402_v35 = vpop.xlane.xlu0 %635 }
 0x1dd   :  { %1797 = vlog2.f32 %v3402_v35 }
 0x1de   :  { %v1792_v20 = vpop.eup %1791  ;;  %v3405_v48 = vpop.xlane.xlu1 %1241  ;;  %1799 = vrcp.f32 %v3909_v23 }
 0x1df   :  { %v762_v39 = vmul.f32 0.6931472, %v1792_v20 }
 0x1e0   :  { %v3408_v43 = vpop.xlane.xlu0 %638 }
 0x1e1   :  { %1801 = vlog2.f32 %v3408_v43  ;;  %v961_v37 = vadd.f32 -13.815511, %v762_v39  ;;  %v1089_v29 = vsub.f32 %v3910_v53, %v762_v39  ;;  %v3915_v39 = vld [vmem:[#allocation84_spill] sm:$0xff] }
 0x1e2   :  { %v1794_v28 = vpop.eup %1793  ;;  %1803 = vrcp.f32 %v3911_v0  ;;  %v3413_v38 = vpop.xlane.xlu1 %1244 }
 0x1e3   :  { %v764_v24 = vmul.f32 0.6931472, %v1794_v28  ;;  %vm1025_vm12 = vcmp.ge.f32.partialorder %v3910_v53, %v961_v37  ;;  %v1153_v52 = vmul.f32 %v2920_v61, %v1089_v29  ;;  %1805 = vrcp.f32 %v3912_v40  ;;  %v3916_v29 = vld [vmem:[#allocation7_spill] sm:$0xff] }
 0x1e4   :  { %v3418_v6 = vpop.xlane.xlu0 %641 }
 0x1e5   :  { %1807 = vlog2.f32 %v3418_v6  ;;  %v1217_v13 = vsel %vm1025_vm12, %v1153_v52, 0.0  ;;  %v962_v56 = vadd.f32 -13.815511, %v764_v24  ;;  %v1090_v8 = vsub.f32 %v3913_v34, %v764_v24  ;;  %v3917_v24 = vld [vmem:[#allocation85_spill] sm:$0xff] }
 0x1e6   :  { %v1796_v60 = vpop.eup %1795  ;;  %1809 = vrcp.f32 %v3914_v41  ;;  %v1393_v16 = vsel %vm72_vm0, %v1217_v13, 0.0  ;;  %v3424_v20 = vpop.xlane.xlu1 %1247 }
 0x1e7   :  { %v766_v33 = vmul.f32 0.6931472, %v1796_v60  ;;  %1394 = vadd.xlane.f32.xlu0 %v1393_v16  ;;  %vm1026_vm13 = vcmp.ge.f32.partialorder %v3913_v34, %v962_v56  ;;  %v1154_v61 = vmul.f32 %v2944_v19, %v1090_v8  ;;  %1811 = vrcp.f32 %v3915_v39  ;;  %v3918_v56 = vld [vmem:[#allocation8_spill] sm:$0xff]  ;;  %v3919_v16 = vld [vmem:[#allocation83_spill] sm:$0xff] }
 0x1e8   :  { %v3429_v23 = vpop.xlane.xlu0 %644 }
 0x1e9   :  { %1813 = vlog2.f32 %v3429_v23  ;;  %v1218_v37 = vsel %vm1026_vm13, %v1154_v61, 0.0  ;;  %v963_v53 = vadd.f32 -13.815511, %v766_v33  ;;  %v1091_v28 = vsub.f32 %v3916_v29, %v766_v33 }
 0x1ea   :  { %v1798_v0 = vpop.eup %1797  ;;  %1815 = vrcp.f32 %v3917_v24  ;;  %v1396_v52 = vsel %vm72_vm0, %v1218_v37, 0.0  ;;  %v3435_v13 = vpop.xlane.xlu1 %1250 }
 0x1eb   :  { %v768_v40 = vmul.f32 0.6931472, %v1798_v0  ;;  %1397 = vadd.xlane.f32.xlu1 %v1396_v52  ;;  %vm1027_vm14 = vcmp.ge.f32.partialorder %v3916_v29, %v963_v53  ;;  %v1155_v19 = vmul.f32 %v2959_v2, %v1091_v28  ;;  %1817 = vrcp.f32 %v3918_v56  ;;  %v1800_v8 = vpop.eup %1799  ;;  %v3920_v28 = vld [vmem:[#allocation13_spill] sm:$0xff] }
 0x1ec   :  { %v3440_v34 = vpop.xlane.xlu0 %647  ;;  %v1417_v0 = vmul.f32 %v1800_v8, %v3378_v55  ;;  %v3922_v55 = vld [vmem:[#allocation12_spill] sm:$0xff]  ;;  %v3923_v8 = vld [vmem:[#allocation9_spill] sm:$0xff] }
 0x1ed   :  { %1819 = vlog2.f32 %v3440_v34  ;;  %v1219_v60 = vsel %vm1027_vm14, %v1155_v19, 0.0  ;;  %v964_v41 = vadd.f32 -13.815511, %v768_v40  ;;  %v1092_v33 = vsub.f32 %v3919_v16, %v768_v40  ;;  %v3921_v19 = vld [vmem:[#allocation11_spill] sm:$0xff] }
 0x1ee   :  { %v1802_v61 = vpop.eup %1801  ;;  %1821 = vrcp.f32 %v2931_v50  ;;  %v1399_v39 = vsel %vm72_vm0, %v1219_v60, 0.0  ;;  %v3446_v29 = vpop.xlane.xlu1 %1253 }
 0x1ef   :  { %v1804_v37 = vpop.eup %1803  ;;  %v770_v53 = vmul.f32 0.6931472, %v1802_v61  ;;  %1400 = vadd.xlane.f32.xlu0 %v1399_v39  ;;  %vm1028_vm15 = vcmp.ge.f32.partialorder %v3919_v16, %v964_v41  ;;  %v1156_v2 = vmul.f32 %v2967_v58, %v1092_v33  ;;  %1823 = vrcp.f32 %v3920_v28 }
 0x1f0   :  { %v1418_v24 = vmul.f32 %v1804_v37, %v3382_v18  ;;  %v1806_v52 = vpop.eup %1805  ;;  %1825 = vrcp.f32 %v2964_v49 }
 0x1f1   :  { %v1220_v40 = vsel %vm1028_vm15, %v1156_v2, 0.0  ;;  %v965_v50 = vadd.f32 -13.815511, %v770_v53  ;;  %v1093_v56 = vsub.f32 %v3921_v19, %v770_v53  ;;  %v1419_v61 = vmul.f32 %v1806_v52, %v3389_v57  ;;  %v3924_v57 = vld [vmem:[#allocation17_spill] sm:$0xff] }
 0x1f2   :  { %v1808_v60 = vpop.eup %1807  ;;  %v1402_v41 = vsel %vm72_vm0, %v1220_v40, 0.0  ;;  %v3457_v33 = vpop.xlane.xlu1 %1256  ;;  %1827 = vrcp.f32 %v3923_v8  ;;  %v1481_v39 = vadd.f32 %v1418_v24, %v1417_v0  ;;  %v3925_v40 = vld [vmem:[#allocation15_spill] sm:$0xff]  ;;  %v3927_v24 = vld [vmem:[#allocation25_spill] sm:$0xff] }
 0x1f3   :  { %v1810_v16 = vpop.eup %1809  ;;  %v772_v58 = vmul.f32 0.6931472, %v1808_v60  ;;  %1403 = vadd.xlane.f32.xlu1 %v1402_v41  ;;  %vm1029_vm1 = vcmp.ge.f32.partialorder %v3921_v19, %v965_v50  ;;  %v1157_v18 = vmul.f32 %v3922_v55, %v1093_v56  ;;  %1829 = vrcp.f32 %v3925_v40 }
 0x1f4   :  { %v1420_v37 = vmul.f32 %v1810_v16, %v3395_v12  ;;  %v1812_v53 = vpop.eup %1811  ;;  %v1482_v60 = vadd.f32 %v1481_v39, %v1419_v61  ;;  %v3926_v12 = vld [vmem:[#allocation14_spill] sm:$0xff]  ;;  %1831 = vrcp.f32 %v3927_v24 }
 0x1f5   :  { %v1221_v49 = vsel %vm1029_vm1, %v1157_v18, 0.0  ;;  %v966_v2 = vadd.f32 -13.815511, %v772_v58  ;;  %v1094_v28 = vsub.f32 %v3924_v57, %v772_v58  ;;  %v1421_v41 = vmul.f32 %v1812_v53, %v3400_v25  ;;  %v3928_v39 = vld [vmem:[#allocation10_spill] sm:$0xff] }
 0x1f6   :  { %v1814_v52 = vpop.eup %1813  ;;  %v1405_v50 = vsel %vm72_vm0, %v1221_v49, 0.0  ;;  %v1260_v55 = vpop.xlane.xlu1 %1259  ;;  %v1483_v16 = vadd.f32 %v1482_v60, %v1420_v37  ;;  %1833 = vrcp.f32 %v3015_v42 }
 0x1f7   :  { %v1816_v19 = vpop.eup %1815  ;;  %v774_v56 = vmul.f32 0.6931472, %v1814_v52  ;;  %1406 = vadd.xlane.f32.xlu0 %v1405_v50  ;;  %vm1030_vm2 = vcmp.ge.f32.partialorder %v3924_v57, %v966_v2  ;;  %v1158_v0 = vmul.f32 %v3926_v12, %v1094_v28  ;;  %1835 = vrcp.f32 %v3028_v27 }
 0x1f8   :  { %v1422_v58 = vmul.f32 %v1816_v19, %v3405_v48  ;;  %v1818_v18 = vpop.eup %1817  ;;  %v1484_v49 = vadd.f32 %v1483_v16, %v1421_v41  ;;  %v3929_v48 = vld [vmem:[#allocation18_spill] sm:$0xff]  ;;  %1837 = vrcp.f32 %v3039_v44 }
 0x1f9   :  { %v1222_v8 = vsel %vm1030_vm2, %v1158_v0, 0.0  ;;  %v967_v61 = vadd.f32 -13.815511, %v774_v56  ;;  %v1095_v25 = vsub.f32 %v3928_v39, %v774_v56  ;;  %v1423_v52 = vmul.f32 %v1818_v18, %v3413_v38  ;;  %v3930_v56 = vld [vmem:[#allocation22_spill] sm:$0xff] }
 0x1fa   :  { %v1820_v53 = vpop.eup %1819  ;;  %v1408_v2 = vsel %vm72_vm0, %v1222_v8, 0.0  ;;  %v1263_v40 = vpop.xlane.xlu1 %1262  ;;  %v1485_v60 = vadd.f32 %v1484_v49, %v1422_v58  ;;  %1839 = vrcp.f32 %v3048_v30 }
 0x1fb   :  { %v1822_v57 = vpop.eup %1821  ;;  %v776_v28 = vmul.f32 0.6931472, %v1820_v53  ;;  %1409 = vadd.xlane.f32.xlu1 %v1408_v2  ;;  %vm1031_vm3 = vcmp.ge.f32.partialorder %v3928_v39, %v967_v61  ;;  %v1159_v37 = vmul.f32 %v3929_v48, %v1095_v25  ;;  %1841 = vrcp.f32 %v3058_v63 }
 0x1fc   :  { %v1424_v50 = vmul.f32 %v1822_v57, %v3424_v20  ;;  %v1824_v19 = vpop.eup %1823  ;;  %v1486_v12 = vadd.f32 %v1485_v60, %v1423_v52  ;;  %1843 = vrcp.f32 %v3068_v21 }
 0x1fd   :  { %v1223_v42 = vsel %vm1031_vm3, %v1159_v37, 0.0  ;;  %v968_v41 = vadd.f32 -13.815511, %v776_v28  ;;  %v1096_v38 = vsub.f32 %v3930_v56, %v776_v28  ;;  %v1425_v0 = vmul.f32 %v1824_v19, %v3435_v13  ;;  %v1826_v16 = vpop.eup %1825 }
 0x1fe   :  { %v1411_v24 = vsel %vm72_vm0, %v1223_v42, 0.0  ;;  %v1266_v18 = vpop.xlane.xlu1 %1265  ;;  %v1487_v20 = vadd.f32 %v1486_v12, %v1424_v50  ;;  %v1426_v58 = vmul.f32 %v1826_v16, %v3446_v29  ;;  %1845 = vrcp.f32 %v3078_v17  ;;  %v3932_v42 = vld [vmem:[#allocation86_spill] sm:$0xff] }
 0x1ff   :  { %1412 = vadd.xlane.f32.xlu0 %v1411_v24  ;;  %vm1032_vm4 = vcmp.ge.f32.partialorder %v3930_v56, %v968_v41  ;;  %v1160_v27 = vmul.f32 %v3019_v45, %v1096_v38  ;;  %v1828_v8 = vpop.eup %1827  ;;  %v3933_v56 = vld [vmem:[#allocation21_spill] sm:$0xff] }
 0x200   :  { %v1488_v44 = vadd.f32 %v1487_v20, %v1425_v0  ;;  %v1427_v13 = vmul.f32 %v1828_v8, %v3457_v33  ;;  %v1830_v25 = vpop.eup %1829  ;;  %v3931_v33 = vld [vmem:[#allocation19_spill] sm:$0xff]  ;;  %v3935_v20 = vld [vmem:[#allocation16_spill] sm:$0xff] }
 0x201   :  { %v1224_v61 = vsel %vm1032_vm4, %v1160_v27, 0.0  ;;  %v1428_v49 = vmul.f32 %v1830_v25, %v1260_v55  ;;  %v1832_v30 = vpop.eup %1831  ;;  %1847 = vrcp.f32 %v3931_v33  ;;  %v3934_v0 = vld [vmem:[#allocation27_spill] sm:$0xff]  ;;  %v3936_v25 = vld [vmem:[#allocation20_spill] sm:$0xff] }
 0x202   :  { %v1414_v39 = vsel %vm72_vm0, %v1224_v61, 0.0  ;;  %v1269_v53 = vpop.xlane.xlu1 %1268  ;;  %v1489_v45 = vadd.f32 %v1488_v44, %v1426_v58  ;;  %v1429_v2 = vmul.f32 %v1832_v30, %v1263_v40  ;;  %1849 = vrcp.f32 %v3932_v42  ;;  %v3938_v42 = vld [vmem:[#allocation24_spill] sm:$0xff] }
 0x203   :  { %1415 = vadd.xlane.f32.xlu1 %v1414_v39  ;;  %v1834_v29 = vpop.eup %1833  ;;  %1851 = vrcp.f32 %v3933_v56  ;;  %vm1545_vm0 = vcmask 7168  }
 0x204   :  { %v1490_v52 = vadd.f32 %v1489_v45, %v1427_v13  ;;  %v1430_v28 = vmul.f32 %v1834_v29, %v1266_v18  ;;  %v1836_v48 = vpop.eup %1835  ;;  %1853 = vrcp.f32 %v3934_v0 }
 0x205   :  { %v1431_v60 = vmul.f32 %v1836_v48, %v1269_v53  ;;  %v1838_v50 = vpop.eup %1837  ;;  %1855 = vrcp.f32 %v3935_v20 }
 0x206   :  { %v1272_v57 = vpop.xlane.xlu1 %1271  ;;  %v1491_v63 = vadd.f32 %v1490_v52, %v1428_v49  ;;  %1857 = vrcp.f32 %v3112_v3 }
 0x207   :  { %v1432_v55 = vmul.f32 %v1838_v50, %v1272_v57  ;;  %v1840_v41 = vpop.eup %1839  ;;  %1859 = vrcp.f32 %v3936_v25 }
 0x208   :  { %v1492_v37 = vadd.f32 %v1491_v63, %v1429_v2  ;;  %v1842_v12 = vpop.eup %1841  ;;  %1861 = vrcp.f32 %v3127_v15  ;;  %v3937_v63 = vld [vmem:[#allocation23_spill] sm:$0xff] }
 0x209   :  { %v1844_v18 = vpop.eup %1843  ;;  %1863 = vrcp.f32 %v3937_v63 }
 0x20a   :  { %v1275_v19 = vpop.xlane.xlu1 %1274  ;;  %v1493_v21 = vadd.f32 %v1492_v37, %v1430_v28  ;;  %1865 = vrcp.f32 %v3141_v5 }
 0x20b   :  { %v1433_v38 = vmul.f32 %v1840_v41, %v1275_v19  ;;  %v1846_v44 = vpop.eup %1845  ;;  %1867 = vrcp.f32 %v3938_v42 }
 0x20c   :  { %v1494_v40 = vadd.f32 %v1493_v21, %v1431_v60  ;;  %1869 = vrcp.f32 %v3156_v22 }
 0x20e   :  { %v1278_v17 = vpop.xlane.xlu1 %1277  ;;  %v1495_v24 = vadd.f32 %v1494_v40, %v1432_v55  ;;  %v1848_v49 = vpop.eup %1847 }
 0x20f   :  { %v1434_v16 = vmul.f32 %v1842_v12, %v1278_v17  ;;  %v1850_v2 = vpop.eup %1849  ;;  %v3939_v17 = vld [vmem:[#allocation26_spill] sm:$0xff] }
 0x210   :  { %v1496_v58 = vadd.f32 %v1495_v24, %v1433_v38  ;;  %v1852_v48 = vpop.eup %1851  ;;  %1871 = vrcp.f32 %v3939_v17  ;;  %v3941_v17 = vld [vmem:[#allocation28_spill] sm:$0xff] }
 0x211   :  { %v1281_v27 = vpop.xlane.xlu0 %1280  ;;  %v1854_v60 = vpop.eup %1853  ;;  %1873 = vrcp.f32 %v3169_v14 }
 0x212   :  { %v1435_v8 = vmul.f32 %v1844_v18, %v1281_v27  ;;  %v1497_v61 = vadd.f32 %v1496_v58, %v1434_v16  ;;  %v1856_v55 = vpop.eup %1855  ;;  %1875 = vrcp.f32 %v3060_v46 }
 0x213   :  { %v1858_v40 = vpop.eup %1857  ;;  %1877 = vrcp.f32 %v3187_v31 }
 0x214   :  { %v1498_v53 = vadd.f32 %v1497_v61, %v1435_v8  ;;  %v1860_v24 = vpop.eup %1859  ;;  %1879 = vrcp.f32 %v3070_v1 }
 0x215   :  { %v1284_v13 = vpop.xlane.xlu1 %1283  ;;  %v1287_v39 = vpop.xlane.xlu0 %1286  ;;  %1881 = vrcp.f32 %v3207_v26 }
 0x216   :  { %v1436_v45 = vmul.f32 %v1846_v44, %v1284_v13  ;;  %v1437_v52 = vmul.f32 %v1848_v49, %v1287_v39  ;;  %v1862_v27 = vpop.eup %1861  ;;  %1883 = vrcp.f32 %v3080_v62 }
 0x217   :  { %v1864_v61 = vpop.eup %1863  ;;  %1885 = vrcp.f32 %v3227_v9 }
 0x218   :  { %v1499_v30 = vadd.f32 %v1498_v53, %v1436_v45  ;;  %v1866_v39 = vpop.eup %1865  ;;  %1887 = vrcp.f32 %v3090_v4 }
 0x219   :  { %v1290_v29 = vpop.xlane.xlu1 %1289  ;;  %v1293_v57 = vpop.xlane.xlu0 %1292  ;;  %1889 = vrcp.f32 %v3244_v47 }
 0x21a   :  { %v1500_v28 = vadd.f32 %v1499_v30, %v1437_v52  ;;  %v1438_v3 = vmul.f32 %v1850_v2, %v1290_v29  ;;  %v1439_v37 = vmul.f32 %v1852_v48, %v1293_v57  ;;  %v1868_v49 = vpop.eup %1867 }
 0x21b   :  { %v1870_v46 = vpop.eup %1869 }
 0x21c   :  { %v1501_v33 = vadd.f32 %v1500_v28, %v1438_v3 }
 0x21d   :  { %v1296_v50 = vpop.xlane.xlu1 %1295  ;;  %v1299_v19 = vpop.xlane.xlu0 %1298 }
 0x21e   :  { %v1502_v15 = vadd.f32 %v1501_v33, %v1439_v37  ;;  %v1440_v21 = vmul.f32 %v1854_v60, %v1296_v50  ;;  %v1441_v56 = vmul.f32 %v1856_v55, %v1299_v19  ;;  %v1872_v63 = vpop.eup %1871 }
 0x21f   :  { %v1874_v1 = vpop.eup %1873 }
 0x220   :  { %v1503_v41 = vadd.f32 %v1502_v15, %v1440_v21  ;;  %v1876_v60 = vpop.eup %1875  ;;  %v3940_v21 = vld [vmem:[#allocation87_spill] sm:$0xff] }
 0x221   :  { %v1302_v38 = vpop.xlane.xlu1 %1301  ;;  %v1305_v12 = vpop.xlane.xlu0 %1304  ;;  %1891 = vrcp.f32 %v3940_v21 }
 0x222   :  { %v1504_v5 = vadd.f32 %v1503_v41, %v1441_v56  ;;  %v1442_v0 = vmul.f32 %v1858_v40, %v1302_v38  ;;  %v1443_v18 = vmul.f32 %v1860_v24, %v1305_v12  ;;  %v1878_v62 = vpop.eup %1877  ;;  %1893 = vrcp.f32 %v3261_v59 }
 0x223   :  { %v1880_v41 = vpop.eup %1879  ;;  %1895 = vrcp.f32 %v3941_v17 }
 0x224   :  { %v1505_v16 = vadd.f32 %v1504_v5, %v1442_v0  ;;  %v1882_v4 = vpop.eup %1881  ;;  %1897 = vrcp.f32 %v3278_v36 }
 0x225   :  { %v1308_v20 = vpop.xlane.xlu1 %1307  ;;  %v1311_v58 = vpop.xlane.xlu0 %1310  ;;  %1899 = vrcp.f32 %v3139_v54 }
 0x226   :  { %v1506_v22 = vadd.f32 %v1505_v16, %v1443_v18  ;;  %v1444_v8 = vmul.f32 %v1862_v27, %v1308_v20  ;;  %v1445_v13 = vmul.f32 %v1864_v61, %v1311_v58  ;;  %v1884_v0 = vpop.eup %1883  ;;  %1901 = vrcp.f32 %v3297_v32 }
 0x227   :  { %v1886_v18 = vpop.eup %1885  ;;  %1903 = vrcp.f32 %v3158_v51 }
 0x228   :  { %v1507_v44 = vadd.f32 %v1506_v22, %v1444_v8  ;;  %v1888_v22 = vpop.eup %1887 }
 0x229   :  { %v1314_v25 = vpop.xlane.xlu1 %1313  ;;  %v1317_v53 = vpop.xlane.xlu0 %1316 }
 0x22a   :  { %v1508_v14 = vadd.f32 %v1507_v44, %v1445_v13  ;;  %v1446_v45 = vmul.f32 %v1866_v39, %v1314_v25  ;;  %v1447_v52 = vmul.f32 %v1868_v49, %v1317_v53  ;;  %v1890_v44 = vpop.eup %1889 }
 0x22c   :  { %v1509_v30 = vadd.f32 %v1508_v14, %v1446_v45  ;;  %v3942_v14 = vld [vmem:[#allocation33_spill] sm:$0xff] }
 0x22d   :  { %v1320_v2 = vpop.xlane.xlu1 %1319  ;;  %v1323_v29 = vpop.xlane.xlu0 %1322  ;;  %1905 = vrcp.f32 %v3942_v14 }
 0x22e   :  { %v1510_v31 = vadd.f32 %v1509_v30, %v1447_v52  ;;  %v1448_v57 = vmul.f32 %v1870_v46, %v1320_v2  ;;  %v1449_v3 = vmul.f32 %v1872_v63, %v1323_v29  ;;  %v1892_v53 = vpop.eup %1891  ;;  %v3943_v46 = vld [vmem:[#allocation29_spill] sm:$0xff] }
 0x22f   :  { %v1894_v54 = vpop.eup %1893  ;;  %1907 = vrcp.f32 %v3943_v46 }
 0x230   :  { %v1511_v28 = vadd.f32 %v1510_v31, %v1448_v57  ;;  %v1896_v29 = vpop.eup %1895  ;;  %v3944_v31 = vld [vmem:[#allocation35_spill] sm:$0xff] }
 0x231   :  { %v1326_v48 = vpop.xlane.xlu1 %1325  ;;  %v1329_v33 = vpop.xlane.xlu0 %1328  ;;  %1909 = vrcp.f32 %v3944_v31 }
 0x232   :  { %v1512_v26 = vadd.f32 %v1511_v28, %v1449_v3  ;;  %v1450_v37 = vmul.f32 %v1874_v1, %v1326_v48  ;;  %v1451_v19 = vmul.f32 %v1876_v60, %v1329_v33  ;;  %v1898_v51 = vpop.eup %1897  ;;  %v3945_v1 = vld [vmem:[#allocation30_spill] sm:$0xff] }
 0x233   :  { %1911 = vrcp.f32 %v3945_v1 }
 0x234   :  { %v1513_v50 = vadd.f32 %v1512_v26, %v1450_v37  ;;  %v1900_v26 = vpop.eup %1899  ;;  %v3946_v37 = vld [vmem:[#allocation37_spill] sm:$0xff] }
 0x235   :  { %v1332_v42 = vpop.xlane.xlu1 %1331  ;;  %v1335_v15 = vpop.xlane.xlu0 %1334  ;;  %1913 = vrcp.f32 %v3946_v37 }
 0x236   :  { %v1514_v9 = vadd.f32 %v1513_v50, %v1451_v19  ;;  %v1452_v55 = vmul.f32 %v1878_v62, %v1332_v42  ;;  %v1453_v40 = vmul.f32 %v1880_v41, %v1335_v15  ;;  %v1902_v19 = vpop.eup %1901  ;;  %v3947_v15 = vld [vmem:[#allocation31_spill] sm:$0xff]  ;;  %v3948_v41 = vld [vmem:[#allocation32_spill] sm:$0xff] }
 0x237   :  { %1915 = vrcp.f32 %v3947_v15 }
 0x238   :  { %v1515_v56 = vadd.f32 %v1514_v9, %v1452_v55  ;;  %v1904_v55 = vpop.eup %1903  ;;  %1917 = vrcp.f32 %v3948_v41 }
 0x239   :  { %v1338_v38 = vpop.xlane.xlu1 %1337  ;;  %v1341_v12 = vpop.xlane.xlu0 %1340  ;;  %1919 = vrcp.f32 %v3386_v11 }
 0x23a   :  { %v1516_v47 = vadd.f32 %v1515_v56, %v1453_v40  ;;  %v1454_v5 = vmul.f32 %v1882_v4, %v1338_v38  ;;  %v1455_v16 = vmul.f32 %v1884_v0, %v1341_v12  ;;  %v1906_v4 = vpop.eup %1905  ;;  %1921 = vrcp.f32 %v3392_v7 }
 0x23b   :  { %1923 = vrcp.f32 %v3397_v10 }
 0x23c   :  { %v1517_v24 = vadd.f32 %v1516_v47, %v1454_v5  ;;  %v1908_v5 = vpop.eup %1907  ;;  %1925 = vrcp.f32 %v3402_v35 }
 0x23d   :  { %v1344_v27 = vpop.xlane.xlu1 %1343  ;;  %v1347_v20 = vpop.xlane.xlu0 %1346  ;;  %1927 = vrcp.f32 %v3408_v43 }
 0x23e   :  { %v1518_v59 = vadd.f32 %v1517_v24, %v1455_v16  ;;  %v1456_v58 = vmul.f32 %v1886_v18, %v1344_v27  ;;  %v1457_v61 = vmul.f32 %v1888_v22, %v1347_v20  ;;  %v1910_v16 = vpop.eup %1909  ;;  %1929 = vrcp.f32 %v3418_v6 }
 0x23f   :  { %1931 = vrcp.f32 %v3429_v23 }
 0x240   :  { %v1519_v8 = vadd.f32 %v1518_v59, %v1456_v58  ;;  %v1912_v58 = vpop.eup %1911  ;;  %1933 = vrcp.f32 %v3440_v34 }
 0x241   :  { %v1350_v13 = vpop.xlane.xlu1 %1349  ;;  %v1353_v39 = vpop.xlane.xlu0 %1352 }
 0x242   :  { %v1520_v36 = vadd.f32 %v1519_v8, %v1457_v61  ;;  %v1458_v25 = vmul.f32 %v1890_v44, %v1350_v13  ;;  %v1459_v49 = vmul.f32 %v1892_v53, %v1353_v39  ;;  %v1914_v61 = vpop.eup %1913 }
 0x244   :  { %v1521_v45 = vadd.f32 %v1520_v36, %v1458_v25  ;;  %v1916_v25 = vpop.eup %1915 }
 0x245   :  { %v1356_v30 = vpop.xlane.xlu1 %1355  ;;  %v1359_v52 = vpop.xlane.xlu0 %1358 }
 0x246   :  { %v1522_v32 = vadd.f32 %v1521_v45, %v1459_v49  ;;  %v1460_v2 = vmul.f32 %v1894_v54, %v1356_v30  ;;  %v1461_v63 = vmul.f32 %v1896_v29, %v1359_v52  ;;  %v1918_v45 = vpop.eup %1917 }
 0x247   :  { %v1920_v46 = vpop.eup %1919 }
 0x248   :  { %v1523_v57 = vadd.f32 %v1522_v32, %v1460_v2  ;;  %v1922_v31 = vpop.eup %1921 }
 0x249   :  { %v1362_v28 = vpop.xlane.xlu1 %1361  ;;  %v1365_v3 = vpop.xlane.xlu0 %1364 }
 0x24a   :  { %v1524_v48 = vadd.f32 %v1523_v57, %v1461_v63  ;;  %v1462_v33 = vmul.f32 %v1898_v51, %v1362_v28  ;;  %v1463_v50 = vmul.f32 %v1900_v26, %v1365_v3  ;;  %v1924_v28 = vpop.eup %1923 }
 0x24b   :  { %v1926_v10 = vpop.eup %1925 }
 0x24c   :  { %v1525_v60 = vadd.f32 %v1524_v48, %v1462_v33  ;;  %v1928_v43 = vpop.eup %1927 }
 0x24d   :  { %v1368_v62 = vpop.xlane.xlu1 %1367  ;;  %v1371_v42 = vpop.xlane.xlu0 %1370 }
 0x24e   :  { %v1526_v21 = vadd.f32 %v1525_v60, %v1463_v50  ;;  %v1464_v9 = vmul.f32 %v1902_v19, %v1368_v62  ;;  %v1465_v40 = vmul.f32 %v1904_v55, %v1371_v42  ;;  %v1930_v60 = vpop.eup %1929 }
 0x24f   :  { %v1932_v62 = vpop.eup %1931 }
 0x250   :  { %v1527_v56 = vadd.f32 %v1526_v21, %v1464_v9  ;;  %v1934_v23 = vpop.eup %1933 }
 0x251   :  { %v1374_v38 = vpop.xlane.xlu1 %1373  ;;  %v1377_v12 = vpop.xlane.xlu0 %1376 }
 0x252   :  { %v1528_v17 = vadd.f32 %v1527_v56, %v1465_v40  ;;  %v1466_v47 = vmul.f32 %v1906_v4, %v1374_v38  ;;  %v1467_v24 = vmul.f32 %v1908_v5, %v1377_v12 }
 0x254   :  { %v1529_v0 = vadd.f32 %v1528_v17, %v1466_v47 }
 0x255   :  { %v1380_v18 = vpop.xlane.xlu1 %1379  ;;  %v1383_v27 = vpop.xlane.xlu0 %1382 }
 0x256   :  { %v1530_v20 = vadd.f32 %v1529_v0, %v1467_v24  ;;  %v1468_v59 = vmul.f32 %v1910_v16, %v1380_v18  ;;  %v1469_v8 = vmul.f32 %v1912_v58, %v1383_v27 }
 0x258   :  { %v1531_v22 = vadd.f32 %v1530_v20, %v1468_v59 }
 0x259   :  { %v1386_v44 = vpop.xlane.xlu1 %1385  ;;  %v1389_v13 = vpop.xlane.xlu0 %1388 }
 0x25a   :  { %v1532_v39 = vadd.f32 %v1531_v22, %v1469_v8  ;;  %v1470_v36 = vmul.f32 %v1914_v61, %v1386_v44  ;;  %v1471_v14 = vmul.f32 %v1916_v25, %v1389_v13 }
 0x25c   :  { %v1533_v53 = vadd.f32 %v1532_v39, %v1470_v36 }
 0x25d   :  { %v1392_v49 = vpop.xlane.xlu1 %1391 }
 0x25e   :  { %v1534_v54 = vadd.f32 %v1533_v53, %v1471_v14  ;;  %v1472_v30 = vmul.f32 %v1918_v45, %v1392_v49 }
 0x260   :  { %v1535_v52 = vadd.f32 %v1534_v54, %v1472_v30 }
 0x270   :  { %v1395_v32 = vpop.xlane.xlu0 %1394 }
 0x271   :  { %v1473_v2 = vmul.f32 %v1920_v46, %v1395_v32 }
 0x273   :  { %v1536_v29 = vadd.f32 %v1535_v52, %v1473_v2 }
 0x274   :  { %v1398_v57 = vpop.xlane.xlu1 %1397 }
 0x275   :  { %v1474_v63 = vmul.f32 %v1922_v31, %v1398_v57 }
 0x277   :  { %v1537_v51 = vadd.f32 %v1536_v29, %v1474_v63 }
 0x278   :  { %v1401_v11 = vpop.xlane.xlu0 %1400 }
 0x279   :  { %v1475_v3 = vmul.f32 %v1924_v28, %v1401_v11 }
 0x27b   :  { %v1538_v7 = vadd.f32 %v1537_v51, %v1475_v3 }
 0x27c   :  { %v1404_v35 = vpop.xlane.xlu1 %1403 }
 0x27d   :  { %v1476_v1 = vmul.f32 %v1926_v10, %v1404_v35 }
 0x27f   :  { %v1539_v48 = vadd.f32 %v1538_v7, %v1476_v1 }
 0x280   :  { %v1407_v33 = vpop.xlane.xlu0 %1406 }
 0x281   :  { %v1477_v26 = vmul.f32 %v1928_v43, %v1407_v33 }
 0x283   :  { %v1540_v37 = vadd.f32 %v1539_v48, %v1477_v26 }
 0x284   :  { %v1410_v50 = vpop.xlane.xlu1 %1409 }
 0x285   :  { %v1478_v6 = vmul.f32 %v1930_v60, %v1410_v50 }
 0x287   :  { %v1541_v19 = vadd.f32 %v1540_v37, %v1478_v6 }
 0x288   :  { %v1413_v42 = vpop.xlane.xlu0 %1412 }
 0x289   :  { %v1479_v15 = vmul.f32 %v1932_v62, %v1413_v42 }
 0x28b   :  { %v1542_v21 = vadd.f32 %v1541_v19, %v1479_v15 }
 0x28c   :  { %v1416_v9 = vpop.xlane.xlu1 %1415 }
 0x28d   :  { %v1480_v55 = vmul.f32 %v1934_v23, %v1416_v9 }
 0x28f   :  { %v1543_v41 = vadd.f32 %v1542_v21, %v1480_v55 }
 0x291   :  { %v1544_v56 = vsub.f32 0.0, %v1543_v41 }
 0x293   :  { %1546 = vst.msk [vmem:[%s3540_s1] sm:$0xff] %vm1545_vm0, %v1544_v56 }

</bundles_post_ra>
